<compile_context>
chip_gen: v6e
topology: v6e:2x2x1
jax: 0.10.0
libtpu: 0.0.40
codegen_flags: <defaults>
</compile_context>

<pallas_src>
import functools

import jax
import jax.numpy as jnp
from jax.experimental import pallas as pl
from jax.experimental.pallas import tpu as pltpu


# ----------------------------------------------------------------------------
# Generation-aware hardware query (cached at trace/setup time)
# ----------------------------------------------------------------------------
@functools.lru_cache(maxsize=1)
def _vmem_capacity_bytes():
    try:
        info = pltpu.get_tpu_info()
        cap = int(getattr(info, "vmem_capacity_bytes", 0) or 0)
        if cap > 0:
            return cap
    except Exception:
        pass
    return 128 << 20        # v5e/v6e default if query unavailable


def _is_small_vmem_part():
    """True on v7x-class parts (<=64 MiB VMEM per TensorCore)."""
    return _vmem_capacity_bytes() <= (64 << 20)


def _vmem_limit_clamp_bytes():
    # 128 MiB parts (v5e/v6e): allow up to 64 MiB scoped VMEM.
    # 64 MiB parts (v7x): stay near the 32 MiB scoped default.
    return (30 << 20) if _is_small_vmem_part() else (64 << 20)


def _tiled_workset_budget_bytes():
    # Budget for the *full* in-kernel working set of one tile
    # (double-buffered native input + ~4 f32 full-width temporaries).
    return (12 << 20) if _is_small_vmem_part() else (24 << 20)


def _fused_budget_bytes():
    # Whole-array blocks, no double buffering: inputs + f32 temps.
    return (16 << 20) if _is_small_vmem_part() else (24 << 20)


# ----------------------------------------------------------------------------
# Shared in-kernel helper: row-wise softmax cross-entropy partials
# ----------------------------------------------------------------------------
def _ce_sum_count(logits, labels, row_mask=None):
    """Returns (sum of per-row CE over valid rows, valid-row count) as f32.

    logits : (n, c) any float dtype (cast to f32 HERE, not in the wrapper).
    labels : (n, 1) int32.  Labels outside [0, c) (e.g. ignore_index=-100)
             are excluded from both sum and count.
    row_mask : optional (n, 1) bool marking real (non-padded) rows.
    """
    logits = logits.astype(jnp.float32)
    n, c = logits.shape

    valid = jnp.logical_and(labels >= 0, labels < c)            # (n, 1)
    if row_mask is not None:
        valid = jnp.logical_and(valid, row_mask)

    col = jax.lax.broadcasted_iota(jnp.int32, (n, c), 1)
    # gather the *unshifted* target logit (independent of the max pass);
    # row_max is added back per row below.
    tgt = jnp.sum(jnp.where(col == labels, logits, 0.0),
                  axis=-1, keepdims=True)                       # (n, 1)

    row_max = jnp.max(logits, axis=-1, keepdims=True)           # (n, 1)
    shifted = logits - row_max
    sumexp = jnp.sum(jnp.exp(shifted), axis=-1, keepdims=True)  # (n, 1)

    # select-based masking: garbage in padded rows never propagates
    per_row = jnp.where(valid, jnp.log(sumexp) + row_max - tgt, 0.0)
    return jnp.sum(per_row), jnp.sum(valid.astype(jnp.float32))


# ----------------------------------------------------------------------------
# Kernel 1: row-tiled cross-entropy (per-tile partial sums + counts)
# ----------------------------------------------------------------------------
def _ce_tiled_kernel(logits_ref, labels_ref, out_ref, *, n_rows):
    i = pl.program_id(0)
    logits = logits_ref[...]                                    # (TM, C) native dtype
    labels = labels_ref[...]                                    # (TM, 1) int32
    tm = logits.shape[0]

    # mask rows of the (possibly partial) tail tile
    row = jax.lax.broadcasted_iota(jnp.int32, (tm, 1), 0) + i * tm
    part_sum, part_cnt = _ce_sum_count(logits, labels, row_mask=(row < n_rows))

    # lane-dense (8,128) partial-output block: [0,0]=sum, [0,1]=count, rest 0
    sub = jax.lax.broadcasted_iota(jnp.int32, (8, 128), 0)
    lane = jax.lax.broadcasted_iota(jnp.int32, (8, 128), 1)
    out_ref[...] = jnp.where((sub == 0) & (lane == 0), part_sum,
                   jnp.where((sub == 0) & (lane == 1), part_cnt, 0.0))


def _choose_tile_m(n, c, itemsize):
    """Row tile sized on the full f32 working set, generation-aware.

    Per-row footprint ≈ 2 double-buffered native logits rows + ~4 full-width
    f32 temporaries (upcast / shifted / exp / select) + labels & partials.
    """
    budget = _tiled_workset_budget_bytes()
    per_row = 2 * c * itemsize + 4 * c * 4 + 64
    rows = max(8, budget // max(per_row, 1))
    rows = max(8, (rows // 8) * 8)              # multiple of 8 (sublane)
    rows = min(rows, 4096)                      # diminishing returns past ~1-2k rows

    if n <= rows:
        # Whole array fits in one block. Still split large-N problems into 2
        # tiles so the "parallel" grid axis can shard across v7x's 2 TCs.
        if n >= 512:
            half = ((pl.cdiv(n, 2) + 7) // 8) * 8
            return int(min(half, n))
        return int(n)                           # single block == full array dim
    return int(rows)


def cross_entropy_pallas(logits, labels, *, tile_m=None):
    """logits: [N, C] float (native dtype), labels: [N] int. Mean CE scalar."""
    n, c = logits.shape
    itemsize = jnp.dtype(logits.dtype).itemsize
    if tile_m is None:
        tile_m = _choose_tile_m(n, c, itemsize)
    else:
        tile_m = int(tile_m)
        tile_m = n if tile_m >= n else max(8, (tile_m // 8) * 8)

    labels2d = labels.reshape(n, 1).astype(jnp.int32)
    num_tiles = pl.cdiv(n, tile_m)

    # explicit VMEM budget: 2x double-buffered inputs + partial output + f32 temps
    est = (2 * tile_m * c * itemsize + 2 * tile_m * 4 + 2 * 8 * 128 * 4
           + 5 * tile_m * c * 4)
    vmem_limit = int(min(max(est + (2 << 20), 4 << 20), _vmem_limit_clamp_bytes()))

    # TODO(synk): consider pipeline_mode=pl.Buffered(3) on the logits BlockSpec
    # for very small C on v7x if xprof shows exposed DMA.
    out = pl.pallas_call(
        functools.partial(_ce_tiled_kernel, n_rows=n),
        out_shape=jax.ShapeDtypeStruct((8 * num_tiles, 128), jnp.float32),
        grid=(num_tiles,),
        in_specs=[
            pl.BlockSpec((tile_m, c), lambda i: (i, 0)),
            pl.BlockSpec((tile_m, 1), lambda i: (i, 0)),
        ],
        out_specs=pl.BlockSpec((8, 128), lambda i: (i, 0)),
        compiler_params=pltpu.CompilerParams(
            dimension_semantics=("parallel",),   # no carried state -> megacore-friendly
            vmem_limit_bytes=vmem_limit),
    )(logits, labels2d)

    # single reduction over both partial columns
    sums = jnp.sum(out[:, :2], axis=0)
    # TODO(synk): PyTorch returns NaN when every label is ignored; we clamp to 0.
    return sums[0] / jnp.maximum(sums[1], 1.0)


# ----------------------------------------------------------------------------
# Kernel 2: fused 3-way cross-entropy (one launch for the whole Loss module)
# ----------------------------------------------------------------------------
def _fused_ce3_kernel(wsel_ref, lg0, lb0, lg1, lb1, lg2, lb2, out_ref):
    # wsel_ref (SMEM, f32[6]): [w0, w1, w2, sel0, sel1, sel2]
    s0, c0 = _ce_sum_count(lg0[...], lb0[...])
    s1, c1 = _ce_sum_count(lg1[...], lb1[...])
    s2, c2 = _ce_sum_count(lg2[...], lb2[...])
    l0 = s0 / jnp.maximum(c0, 1.0)
    l1 = s1 / jnp.maximum(c1, 1.0)
    l2 = s2 / jnp.maximum(c2, 1.0)
    wl0 = l0 * wsel_ref[0]
    wl1 = l1 * wsel_ref[1]
    wl2 = l2 * wsel_ref[2]
    total = wl0 * wsel_ref[3] + wl1 * wsel_ref[4] + wl2 * wsel_ref[5]
    lane = jax.lax.broadcasted_iota(jnp.int32, (1, 128), 1)
    out_ref[...] = jnp.where(lane == 0, wl0,
                   jnp.where(lane == 1, wl1,
                   jnp.where(lane == 2, wl2,
                   jnp.where(lane == 3, total, 0.0))))


def fused_cross_entropy3_pallas(pairs, wsel):
    """pairs: list of 3 (logits [N,C], labels [N]) tuples.
    wsel: f32[6] = 3 loss weights followed by 3 selection flags.
    Returns (weighted_loss0, weighted_loss1, weighted_loss2, total_loss)."""
    flat = [wsel]
    specs = [pl.BlockSpec(memory_space=pltpu.MemorySpace.SMEM)]
    est = 0
    for lg, lb in pairs:
        n, c = lg.shape
        lb2 = lb.reshape(n, 1).astype(jnp.int32)
        flat += [lg, lb2]
        specs += [pl.BlockSpec((n, c), lambda: (0, 0)),
                  pl.BlockSpec((n, 1), lambda: (0, 0))]
        est += n * c * (jnp.dtype(lg.dtype).itemsize + 16) + n * 8
    vmem_limit = int(min(max(est + (2 << 20), 4 << 20), _vmem_limit_clamp_bytes()))

    out = pl.pallas_call(
        _fused_ce3_kernel,
        out_shape=jax.ShapeDtypeStruct((1, 128), jnp.float32),
        in_specs=specs,
        out_specs=pl.BlockSpec((1, 128), lambda: (0, 0)),
        compiler_params=pltpu.CompilerParams(vmem_limit_bytes=vmem_limit),
    )(*flat)
    return out[0, 0], out[0, 1], out[0, 2], out[0, 3]


# ----------------------------------------------------------------------------
# Registry-style loss functions (what LOSS_REGISTRY.get(k)(cfg) would return)
# ----------------------------------------------------------------------------
class _CrossEntropyLossBase:
    def __init__(self, cfg):
        pass

    def fused_inputs(self, data_dict):
        raise NotImplementedError

    def __call__(self, data_dict):
        logits, labels = self.fused_inputs(data_dict)
        return cross_entropy_pallas(logits, labels)


class Og3DLoss(_CrossEntropyLossBase):
    def fused_inputs(self, d):
        return d['og3d_logits'], d['tgt_object_idx']


class ObjClsLoss(_CrossEntropyLossBase):
    def fused_inputs(self, d):
        lg, lb = d['obj_cls_logits'], d['obj_cls_label']    # [B,O,C], [B,O]
        b, o, c = lg.shape
        return lg.reshape(b * o, c), lb.reshape(b * o)


class TxtClsLoss(_CrossEntropyLossBase):
    def fused_inputs(self, d):
        return d['txt_cls_logits'], d['txt_cls_label']


_LOSS_REGISTRY = {
    'og3d_loss': Og3DLoss,
    'obj_cls_loss': ObjClsLoss,
    'txt_cls_loss': TxtClsLoss,
}

_FUSABLE_KEYS = ('og3d_loss', 'obj_cls_loss', 'txt_cls_loss')


# ----------------------------------------------------------------------------
# The Loss aggregator (mirrors the PyTorch forward semantics exactly)
# ----------------------------------------------------------------------------
class Loss:
    def __init__(self, cfg):
        self.all_keys = list(set(cfg['vis_loss_list'] + cfg['loss_list']))
        self.selected_keys = cfg['loss_list']
        self.loss_weights = cfg.get('loss_weights', {})
        self.loss_fn = {}
        for k in self.all_keys:
            self.loss_fn[k] = _LOSS_REGISTRY[k](cfg)

    def _maybe_fused(self, data_dict):
        """Single pallas_call for all three CE losses when shapes permit.

        Returns (dict of weighted losses, total_loss) or None."""
        if sorted(self.loss_fn.keys()) != sorted(_FUSABLE_KEYS):
            return None
        pairs, work_bytes = [], 0
        for k in _FUSABLE_KEYS:
            try:
                lg, lb = self.loss_fn[k].fused_inputs(data_dict)
            except (KeyError, AttributeError):
                return None
            pairs.append((lg, lb))
            n, c = lg.shape
            # native input + ~4x f32 temps per array + labels/partials
            work_bytes += n * c * (jnp.dtype(lg.dtype).itemsize + 16) + n * 8
        if work_bytes > _fused_budget_bytes():
            return None          # too big for whole-array blocks -> tiled path

        wsel = jnp.asarray(
            [float(self.loss_weights.get(k, 1.0)) for k in _FUSABLE_KEYS]
            + [1.0 if k in self.selected_keys else 0.0 for k in _FUSABLE_KEYS],
            dtype=jnp.float32)
        wl0, wl1, wl2, total = fused_cross_entropy3_pallas(pairs, wsel)
        return dict(zip(_FUSABLE_KEYS, (wl0, wl1, wl2))), total

    def forward(self, data_dict):
        # same fallback the PyTorch module performs inside its loop
        if 'txt_cls_loss' in self.loss_fn and 'txt_cls_label' not in data_dict:
            data_dict['txt_cls_label'] = jnp.squeeze(
                data_dict['tgt_object_label'], axis=1)

        all_losses = {}
        fused = self._maybe_fused(data_dict)
        if fused is not None:
            weighted_losses, total_loss = fused
            all_losses.update(weighted_losses)       # already weighted in-kernel
            all_losses['total_loss'] = total_loss    # masked sum from the kernel
            return (total_loss, all_losses)

        for k, fn in self.loss_fn.items():
            cur_loss = fn(data_dict)
            if not isinstance(cur_loss, list):
                cur_dict_loss = {k: cur_loss}
            else:
                cur_dict_loss = {k: cur_loss[0]}
                for ck, cv in cur_loss[1].items():
                    cur_dict_loss[k + '_' + ck] = cv
            cur_dict_loss = {kk: vv * self.loss_weights.get(kk, 1.0)
                             for kk, vv in cur_dict_loss.items()}
            all_losses.update(cur_dict_loss)

        selected_losses = {k: all_losses[k] for k in self.selected_keys}
        total_loss = sum(selected_losses.values())
        all_losses['total_loss'] = total_loss
        return (total_loss, all_losses)

    __call__ = forward


# ----------------------------------------------------------------------------
# Reference (pure JAX) cross-entropy for correctness checks
# ----------------------------------------------------------------------------
def _ce_ref(logits, labels):
    logits = logits.astype(jnp.float32)
    c = logits.shape[-1]
    valid = jnp.logical_and(labels >= 0, labels < c)
    logp = jax.nn.log_softmax(logits, axis=-1)
    safe_labels = jnp.where(valid, labels, 0)
    per = -jnp.take_along_axis(logp, safe_labels[:, None], axis=-1)[:, 0]
    per = jnp.where(valid, per, 0.0)
    return jnp.sum(per) / jnp.maximum(jnp.sum(valid.astype(jnp.float32)), 1.0)


if __name__ == "__main__":
    key = jax.random.PRNGKey(0)
    k1, k2, k3, k4, k5, k6, k7, k8 = jax.random.split(key, 8)

    B, O, C = 8, 32, 64   # batch, object proposals, classes

    cfg = {
        'vis_loss_list': ['og3d_loss', 'obj_cls_loss'],
        'loss_list': ['og3d_loss', 'obj_cls_loss', 'txt_cls_loss'],
        'loss_weights': {'og3d_loss': 1.0, 'obj_cls_loss': 0.5,
                         'txt_cls_loss': 0.3},
    }

    data_dict = {
        'og3d_logits': jax.random.normal(k1, (B, O), jnp.float32),
        'tgt_object_idx': jax.random.randint(k2, (B,), 0, O, jnp.int32),
        'obj_cls_logits': jax.random.normal(k3, (B, O, C), jnp.float32),
        'obj_cls_label': jax.random.randint(k4, (B, O), 0, C, jnp.int32),
        'txt_cls_logits': jax.random.normal(k5, (B, C), jnp.float32),
        'tgt_object_label': jax.random.randint(k6, (B, 1), 0, C, jnp.int32),
    }

    w = cfg['loss_weights']
    ref_og3d = _ce_ref(data_dict['og3d_logits'], data_dict['tgt_object_idx'])
    ref_obj = _ce_ref(data_dict['obj_cls_logits'].reshape(B * O, C),
                      data_dict['obj_cls_label'].reshape(B * O))
    ref_txt = _ce_ref(data_dict['txt_cls_logits'],
                      jnp.squeeze(data_dict['tgt_object_label'], axis=1))

    # ---- 1) fused path (all three losses + total in a single pallas_call) ---
    loss_module = Loss(cfg)
    total_loss, all_losses = loss_module(data_dict)
    jax.block_until_ready(total_loss)
    ref_total = (w['og3d_loss'] * ref_og3d + w['obj_cls_loss'] * ref_obj
                 + w['txt_cls_loss'] * ref_txt)
    assert jnp.allclose(total_loss, ref_total, atol=1e-4, rtol=1e-4), \
        (total_loss, ref_total)
    assert jnp.allclose(all_losses['og3d_loss'], w['og3d_loss'] * ref_og3d,
                        atol=1e-4, rtol=1e-4)
    assert jnp.allclose(all_losses['obj_cls_loss'], w['obj_cls_loss'] * ref_obj,
                        atol=1e-4, rtol=1e-4)
    assert jnp.allclose(all_losses['txt_cls_loss'], w['txt_cls_loss'] * ref_txt,
                        atol=1e-4, rtol=1e-4)

    # ---- 2) per-loss tiled path (dispatcher with a subset of losses) --------
    cfg2 = {
        'vis_loss_list': ['obj_cls_loss'],
        'loss_list': ['og3d_loss', 'obj_cls_loss'],
        'loss_weights': {'og3d_loss': 2.0, 'obj_cls_loss': 0.25},
    }
    total2, _ = Loss(cfg2)(dict(data_dict))
    jax.block_until_ready(total2)
    ref_total2 = 2.0 * ref_og3d + 0.25 * ref_obj
    assert jnp.allclose(total2, ref_total2, atol=1e-4, rtol=1e-4), \
        (total2, ref_total2)

    # ---- 3) tiled kernel: tail masking + ignore_index + native bf16 ---------
    n_odd = 20
    lg_odd = jax.random.normal(k7, (n_odd, C), jnp.float32)
    lb_odd = jax.random.randint(k8, (n_odd,), 0, C, jnp.int32)
    lb_odd = lb_odd.at[3].set(-100)          # ignored row (PyTorch default)
    got = cross_entropy_pallas(lg_odd, lb_odd, tile_m=8)   # grid=3, masked tail
    jax.block_until_ready(got)
    assert jnp.allclose(got, _ce_ref(lg_odd, lb_odd), atol=1e-4, rtol=1e-4)

    lg_bf16 = lg_odd.astype(jnp.bfloat16)    # native-dtype load, f32 math inside
    got_bf16 = cross_entropy_pallas(lg_bf16, lb_odd, tile_m=8)
    jax.block_until_ready(got_bf16)
    assert jnp.allclose(got_bf16, _ce_ref(lg_bf16, lb_odd), atol=1e-3, rtol=1e-3)

    # ---- 4) auto tile-size path (exercises generation-aware _choose_tile_m) -
    n_big = 640
    lg_big = jax.random.normal(k7, (n_big, C), jnp.float32)
    lb_big = jax.random.randint(k8, (n_big,), 0, C, jnp.int32)
    got_big = cross_entropy_pallas(lg_big, lb_big)          # auto tile, >=2 tiles
    jax.block_until_ready(got_big)
    assert jnp.allclose(got_big, _ce_ref(lg_big, lb_big), atol=1e-4, rtol=1e-4)

    print("KERNEL_OK")
</pallas_src>

<mosaic_0001>
module attributes {stable_mosaic.version = 11 : i64} {
  func.func @_fused_ce3_kernel(%arg0: memref<6xf32, #tpu.memory_space<smem>>, %arg1: memref<8x32xf32, #tpu.memory_space<vmem>>, %arg2: memref<8x1xi32, #tpu.memory_space<vmem>>, %arg3: memref<256x64xf32, #tpu.memory_space<vmem>>, %arg4: memref<256x1xi32, #tpu.memory_space<vmem>>, %arg5: memref<8x64xf32, #tpu.memory_space<vmem>>, %arg6: memref<8x1xi32, #tpu.memory_space<vmem>>, %arg7: memref<1x128xf32, #tpu.memory_space<vmem>>) attributes {dimension_semantics = [], scalar_prefetch = 0 : i64, scratch_operands = 0 : i64, tpu.core_type = #tpu.core_type<tc>} {
    %c0 = arith.constant 0 : index
    %c0_0 = arith.constant 0 : index
    %0 = vector.load %arg1[%c0, %c0_0] : memref<8x32xf32, #tpu.memory_space<vmem>>, vector<8x32xf32>
    %c0_1 = arith.constant 0 : index
    %c0_2 = arith.constant 0 : index
    %1 = vector.load %arg2[%c0_1, %c0_2] : memref<8x1xi32, #tpu.memory_space<vmem>>, vector<8x1xi32>
    %c0_i32 = arith.constant 0 : i32
    %2 = vector.broadcast %c0_i32 : i32 to vector<8x1xi32>
    %3 = arith.cmpi sge, %1, %2 : vector<8x1xi32>
    %c32_i32 = arith.constant 32 : i32
    %4 = vector.broadcast %c32_i32 : i32 to vector<8x1xi32>
    %5 = arith.cmpi slt, %1, %4 : vector<8x1xi32>
    %6 = arith.andi %3, %5 : vector<8x1xi1>
    %7 = tpu.iota {dimensions = array<i32: 1>} : vector<8x32xi32>
    %8 = vector.broadcast %1 : vector<8x1xi32> to vector<8x32xi32>
    %9 = arith.cmpi eq, %7, %8 : vector<8x32xi32>
    %cst = arith.constant 0.000000e+00 : f32
    %10 = vector.broadcast %cst : f32 to vector<8x32xf32>
    %11 = arith.select %9, %0, %10 : vector<8x32xi1>, vector<8x32xf32>
    %cst_3 = arith.constant dense<0.000000e+00> : vector<8xf32>
    %12 = vector.multi_reduction <add>, %11, %cst_3 [1] : vector<8x32xf32> to vector<8xf32>
    %13 = vector.shape_cast %12 : vector<8xf32> to vector<8x1xf32>
    %cst_4 = arith.constant dense<0xFF800000> : vector<8xf32>
    %14 = vector.multi_reduction <maximumf>, %0, %cst_4 [1] : vector<8x32xf32> to vector<8xf32>
    %15 = vector.shape_cast %14 : vector<8xf32> to vector<8x1xf32>
    %16 = vector.broadcast %15 : vector<8x1xf32> to vector<8x32xf32>
    %17 = arith.subf %0, %16 : vector<8x32xf32>
    %18 = math.exp %17 : vector<8x32xf32>
    %cst_5 = arith.constant dense<0.000000e+00> : vector<8xf32>
    %19 = vector.multi_reduction <add>, %18, %cst_5 [1] : vector<8x32xf32> to vector<8xf32>
    %20 = vector.shape_cast %19 : vector<8xf32> to vector<8x1xf32>
    %21 = math.log %20 : vector<8x1xf32>
    %22 = arith.addf %21, %15 : vector<8x1xf32>
    %23 = arith.subf %22, %13 : vector<8x1xf32>
    %cst_6 = arith.constant 0.000000e+00 : f32
    %24 = vector.broadcast %cst_6 : f32 to vector<8x1xf32>
    %25 = arith.select %6, %23, %24 : vector<8x1xi1>, vector<8x1xf32>
    %26 = vector.shape_cast %25 : vector<8x1xf32> to vector<1x8x1xf32>
    %cst_7 = arith.constant dense<0.000000e+00> : vector<1xf32>
    %27 = vector.multi_reduction <add>, %26, %cst_7 [1, 2] : vector<1x8x1xf32> to vector<1xf32>
    %28 = vector.shape_cast %27 : vector<1xf32> to vector<1x1x1xf32>
    %29 = vector.extract %28[0, 0, 0] : f32 from vector<1x1x1xf32>
    %30 = arith.extui %6 : vector<8x1xi1> to vector<8x1xi32>
    %31 = arith.sitofp %30 : vector<8x1xi32> to vector<8x1xf32>
    %32 = vector.shape_cast %31 : vector<8x1xf32> to vector<1x8x1xf32>
    %cst_8 = arith.constant dense<0.000000e+00> : vector<1xf32>
    %33 = vector.multi_reduction <add>, %32, %cst_8 [1, 2] : vector<1x8x1xf32> to vector<1xf32>
    %34 = vector.shape_cast %33 : vector<1xf32> to vector<1x1x1xf32>
    %35 = vector.extract %34[0, 0, 0] : f32 from vector<1x1x1xf32>
    %c0_9 = arith.constant 0 : index
    %c0_10 = arith.constant 0 : index
    %36 = vector.load %arg3[%c0_9, %c0_10] : memref<256x64xf32, #tpu.memory_space<vmem>>, vector<256x64xf32>
    %c0_11 = arith.constant 0 : index
    %c0_12 = arith.constant 0 : index
    %37 = vector.load %arg4[%c0_11, %c0_12] : memref<256x1xi32, #tpu.memory_space<vmem>>, vector<256x1xi32>
    %c0_i32_13 = arith.constant 0 : i32
    %38 = vector.broadcast %c0_i32_13 : i32 to vector<256x1xi32>
    %39 = arith.cmpi sge, %37, %38 : vector<256x1xi32>
    %c64_i32 = arith.constant 64 : i32
    %40 = vector.broadcast %c64_i32 : i32 to vector<256x1xi32>
    %41 = arith.cmpi slt, %37, %40 : vector<256x1xi32>
    %42 = arith.andi %39, %41 : vector<256x1xi1>
    %43 = tpu.iota {dimensions = array<i32: 1>} : vector<256x64xi32>
    %44 = vector.broadcast %37 : vector<256x1xi32> to vector<256x64xi32>
    %45 = arith.cmpi eq, %43, %44 : vector<256x64xi32>
    %cst_14 = arith.constant 0.000000e+00 : f32
    %46 = vector.broadcast %cst_14 : f32 to vector<256x64xf32>
    %47 = arith.select %45, %36, %46 : vector<256x64xi1>, vector<256x64xf32>
    %cst_15 = arith.constant dense<0.000000e+00> : vector<256xf32>
    %48 = vector.multi_reduction <add>, %47, %cst_15 [1] : vector<256x64xf32> to vector<256xf32>
    %49 = vector.shape_cast %48 : vector<256xf32> to vector<256x1xf32>
    %cst_16 = arith.constant dense<0xFF800000> : vector<256xf32>
    %50 = vector.multi_reduction <maximumf>, %36, %cst_16 [1] : vector<256x64xf32> to vector<256xf32>
    %51 = vector.shape_cast %50 : vector<256xf32> to vector<256x1xf32>
    %52 = vector.broadcast %51 : vector<256x1xf32> to vector<256x64xf32>
    %53 = arith.subf %36, %52 : vector<256x64xf32>
    %54 = math.exp %53 : vector<256x64xf32>
    %cst_17 = arith.constant dense<0.000000e+00> : vector<256xf32>
    %55 = vector.multi_reduction <add>, %54, %cst_17 [1] : vector<256x64xf32> to vector<256xf32>
    %56 = vector.shape_cast %55 : vector<256xf32> to vector<256x1xf32>
    %57 = math.log %56 : vector<256x1xf32>
    %58 = arith.addf %57, %51 : vector<256x1xf32>
    %59 = arith.subf %58, %49 : vector<256x1xf32>
    %cst_18 = arith.constant 0.000000e+00 : f32
    %60 = vector.broadcast %cst_18 : f32 to vector<256x1xf32>
    %61 = arith.select %42, %59, %60 : vector<256x1xi1>, vector<256x1xf32>
    %62 = vector.shape_cast %61 : vector<256x1xf32> to vector<1x256x1xf32>
    %cst_19 = arith.constant dense<0.000000e+00> : vector<1xf32>
    %63 = vector.multi_reduction <add>, %62, %cst_19 [1, 2] : vector<1x256x1xf32> to vector<1xf32>
    %64 = vector.shape_cast %63 : vector<1xf32> to vector<1x1x1xf32>
    %65 = vector.extract %64[0, 0, 0] : f32 from vector<1x1x1xf32>
    %66 = arith.extui %42 : vector<256x1xi1> to vector<256x1xi32>
    %67 = arith.sitofp %66 : vector<256x1xi32> to vector<256x1xf32>
    %68 = vector.shape_cast %67 : vector<256x1xf32> to vector<1x256x1xf32>
    %cst_20 = arith.constant dense<0.000000e+00> : vector<1xf32>
    %69 = vector.multi_reduction <add>, %68, %cst_20 [1, 2] : vector<1x256x1xf32> to vector<1xf32>
    %70 = vector.shape_cast %69 : vector<1xf32> to vector<1x1x1xf32>
    %71 = vector.extract %70[0, 0, 0] : f32 from vector<1x1x1xf32>
    %c0_21 = arith.constant 0 : index
    %c0_22 = arith.constant 0 : index
    %72 = vector.load %arg5[%c0_21, %c0_22] : memref<8x64xf32, #tpu.memory_space<vmem>>, vector<8x64xf32>
    %c0_23 = arith.constant 0 : index
    %c0_24 = arith.constant 0 : index
    %73 = vector.load %arg6[%c0_23, %c0_24] : memref<8x1xi32, #tpu.memory_space<vmem>>, vector<8x1xi32>
    %c0_i32_25 = arith.constant 0 : i32
    %74 = vector.broadcast %c0_i32_25 : i32 to vector<8x1xi32>
    %75 = arith.cmpi sge, %73, %74 : vector<8x1xi32>
    %c64_i32_26 = arith.constant 64 : i32
    %76 = vector.broadcast %c64_i32_26 : i32 to vector<8x1xi32>
    %77 = arith.cmpi slt, %73, %76 : vector<8x1xi32>
    %78 = arith.andi %75, %77 : vector<8x1xi1>
    %79 = tpu.iota {dimensions = array<i32: 1>} : vector<8x64xi32>
    %80 = vector.broadcast %73 : vector<8x1xi32> to vector<8x64xi32>
    %81 = arith.cmpi eq, %79, %80 : vector<8x64xi32>
    %cst_27 = arith.constant 0.000000e+00 : f32
    %82 = vector.broadcast %cst_27 : f32 to vector<8x64xf32>
    %83 = arith.select %81, %72, %82 : vector<8x64xi1>, vector<8x64xf32>
    %cst_28 = arith.constant dense<0.000000e+00> : vector<8xf32>
    %84 = vector.multi_reduction <add>, %83, %cst_28 [1] : vector<8x64xf32> to vector<8xf32>
    %85 = vector.shape_cast %84 : vector<8xf32> to vector<8x1xf32>
    %cst_29 = arith.constant dense<0xFF800000> : vector<8xf32>
    %86 = vector.multi_reduction <maximumf>, %72, %cst_29 [1] : vector<8x64xf32> to vector<8xf32>
    %87 = vector.shape_cast %86 : vector<8xf32> to vector<8x1xf32>
    %88 = vector.broadcast %87 : vector<8x1xf32> to vector<8x64xf32>
    %89 = arith.subf %72, %88 : vector<8x64xf32>
    %90 = math.exp %89 : vector<8x64xf32>
    %cst_30 = arith.constant dense<0.000000e+00> : vector<8xf32>
    %91 = vector.multi_reduction <add>, %90, %cst_30 [1] : vector<8x64xf32> to vector<8xf32>
    %92 = vector.shape_cast %91 : vector<8xf32> to vector<8x1xf32>
    %93 = math.log %92 : vector<8x1xf32>
    %94 = arith.addf %93, %87 : vector<8x1xf32>
    %95 = arith.subf %94, %85 : vector<8x1xf32>
    %cst_31 = arith.constant 0.000000e+00 : f32
    %96 = vector.broadcast %cst_31 : f32 to vector<8x1xf32>
    %97 = arith.select %78, %95, %96 : vector<8x1xi1>, vector<8x1xf32>
    %98 = vector.shape_cast %97 : vector<8x1xf32> to vector<1x8x1xf32>
    %cst_32 = arith.constant dense<0.000000e+00> : vector<1xf32>
    %99 = vector.multi_reduction <add>, %98, %cst_32 [1, 2] : vector<1x8x1xf32> to vector<1xf32>
    %100 = vector.shape_cast %99 : vector<1xf32> to vector<1x1x1xf32>
    %101 = vector.extract %100[0, 0, 0] : f32 from vector<1x1x1xf32>
    %102 = arith.extui %78 : vector<8x1xi1> to vector<8x1xi32>
    %103 = arith.sitofp %102 : vector<8x1xi32> to vector<8x1xf32>
    %104 = vector.shape_cast %103 : vector<8x1xf32> to vector<1x8x1xf32>
    %cst_33 = arith.constant dense<0.000000e+00> : vector<1xf32>
    %105 = vector.multi_reduction <add>, %104, %cst_33 [1, 2] : vector<1x8x1xf32> to vector<1xf32>
    %106 = vector.shape_cast %105 : vector<1xf32> to vector<1x1x1xf32>
    %107 = vector.extract %106[0, 0, 0] : f32 from vector<1x1x1xf32>
    %cst_34 = arith.constant 1.000000e+00 : f32
    %108 = arith.maximumf %35, %cst_34 : f32
    %109 = arith.divf %29, %108 : f32
    %cst_35 = arith.constant 1.000000e+00 : f32
    %110 = arith.maximumf %71, %cst_35 : f32
    %111 = arith.divf %65, %110 : f32
    %cst_36 = arith.constant 1.000000e+00 : f32
    %112 = arith.maximumf %107, %cst_36 : f32
    %113 = arith.divf %101, %112 : f32
    %c0_37 = arith.constant 0 : index
    %114 = memref.load %arg0[%c0_37] : memref<6xf32, #tpu.memory_space<smem>>
    %115 = arith.mulf %109, %114 : f32
    %c1 = arith.constant 1 : index
    %116 = memref.load %arg0[%c1] : memref<6xf32, #tpu.memory_space<smem>>
    %117 = arith.mulf %111, %116 : f32
    %c2 = arith.constant 2 : index
    %118 = memref.load %arg0[%c2] : memref<6xf32, #tpu.memory_space<smem>>
    %119 = arith.mulf %113, %118 : f32
    %c3 = arith.constant 3 : index
    %120 = memref.load %arg0[%c3] : memref<6xf32, #tpu.memory_space<smem>>
    %121 = arith.mulf %115, %120 : f32
    %c4 = arith.constant 4 : index
    %122 = memref.load %arg0[%c4] : memref<6xf32, #tpu.memory_space<smem>>
    %123 = arith.mulf %117, %122 : f32
    %124 = arith.addf %121, %123 : f32
    %c5 = arith.constant 5 : index
    %125 = memref.load %arg0[%c5] : memref<6xf32, #tpu.memory_space<smem>>
    %126 = arith.mulf %119, %125 : f32
    %127 = arith.addf %124, %126 : f32
    %128 = tpu.iota {dimensions = array<i32: 1>} : vector<1x128xi32>
    %c0_i32_38 = arith.constant 0 : i32
    %129 = vector.broadcast %c0_i32_38 : i32 to vector<1x128xi32>
    %130 = arith.cmpi eq, %128, %129 : vector<1x128xi32>
    %c1_i32 = arith.constant 1 : i32
    %131 = vector.broadcast %c1_i32 : i32 to vector<1x128xi32>
    %132 = arith.cmpi eq, %128, %131 : vector<1x128xi32>
    %c2_i32 = arith.constant 2 : i32
    %133 = vector.broadcast %c2_i32 : i32 to vector<1x128xi32>
    %134 = arith.cmpi eq, %128, %133 : vector<1x128xi32>
    %c3_i32 = arith.constant 3 : i32
    %135 = vector.broadcast %c3_i32 : i32 to vector<1x128xi32>
    %136 = arith.cmpi eq, %128, %135 : vector<1x128xi32>
    %cst_39 = arith.constant 0.000000e+00 : f32
    %137 = vector.broadcast %127 : f32 to vector<1x128xf32>
    %138 = vector.broadcast %cst_39 : f32 to vector<1x128xf32>
    %139 = arith.select %136, %137, %138 : vector<1x128xi1>, vector<1x128xf32>
    %140 = vector.broadcast %119 : f32 to vector<1x128xf32>
    %141 = arith.select %134, %140, %139 : vector<1x128xi1>, vector<1x128xf32>
    %142 = vector.broadcast %117 : f32 to vector<1x128xf32>
    %143 = arith.select %132, %142, %141 : vector<1x128xi1>, vector<1x128xf32>
    %144 = vector.broadcast %115 : f32 to vector<1x128xf32>
    %145 = arith.select %130, %144, %143 : vector<1x128xi1>, vector<1x128xf32>
    %c0_40 = arith.constant 0 : index
    %c0_41 = arith.constant 0 : index
    %146 = vector.load %arg7[%c0_40, %c0_41] : memref<1x128xf32, #tpu.memory_space<vmem>>, vector<1x128xf32>
    tpu.vector_store %arg7[%c0_40, %c0_41], %145 {strides = array<i32>} : memref<1x128xf32, #tpu.memory_space<vmem>>, vector<1x128xf32>,
    return
  }
}

</mosaic_0001>

<bundles_post_ra>
// kernel: tpu_custom_call.1
= control target key start
LH: loop header
LB: loop body
LE: loop exit
PB: predicated region body
PF: predicated region fallthrough
CT: control target
= control target key end

     0   :  { %12 = vsyncpa [#allocation4], 0  ;;  %s2991_s0 = inlined_call_operand.vmem [shape: f32[6], index: 0, kind: input, shape index: {}]   ;;  %s2992_s1 = inlined_call_operand.vmem [shape: f32[8,32], index: 1, kind: input, shape index: {}]   ;;  %s2993_s2 = inlined_call_operand.vmem [shape: s32[8,1], index: 2, kind: input, shape index: {}]   ;;  %s2994_s3 = inlined_call_operand.vmem [shape: f32[256,64], index: 3, kind: input, shape index: {}]   ;;  %s2995_s4 = inlined_call_operand.vmem [shape: s32[256,1], index: 4, kind: input, shape index: {}]   ;;  %s2996_s5 = inlined_call_operand.vmem [shape: f32[8,64], index: 5, kind: input, shape index: {}]   ;;  %s2997_s6 = inlined_call_operand.vmem [shape: s32[8,1], index: 6, kind: input, shape index: {}]   ;;  %s2998_s7 = inlined_call_operand.hbm [shape: f32[1,128], index: 7, kind: output, shape index: {}]  }
   0x1   :  { %13 = vsyncpa [#allocation3], 0  ;;  %s20_s26 = sshll.u32 %s2991_s0, 4  ;;  %s21_s26 = int_to_ptr.vmem [resolvable:$true] %s20_s26 }
   0x2   :  { %s1499_s27 = scalar_lea.vmem %s21_s26, 16  ;;  %p1504_p1 = scmp.lt.s32.totalorder %s21_s26, %s21_s26 }
   0x3   :  { %p1500_p0 = scmp.ne.s32.totalorder %s21_s26, %s1499_s27  ;;  %p1505_p2 = scmp.lt.s32.totalorder %s1499_s27, %s1499_s27 }
   0x5   :  { %p1506_p3 = por %p1505_p2, %p1504_p1 }
   0x7   :  { %p1507_p4 = pnand %p1506_p3, %p1500_p0 }
   0x9   :  { %1510 = shalt.err (!%p1507_p4)
}
   0xa   :  { %s1535_s28 = smov [#allocation2]  }
   0xb   :  { %23 = dma.vmem_to_smem %s21_s26, 16, %s1535_s28, [#allocation4]  }
   0xc   :  { %1531 = dma.done.wait [#allocation4], 16  }
   0xd   :  { %1532 = vsyncadd [#allocation4], 4294967280 }
   0xe   :  { %39 = sfence }
   0xf   :  { %v1586_v0 = vld [vmem:[%s2994_s3] sm:$0xff]  ;;  %vm3062_vm0 = vcmask 523264   ;;  %v1591_v1 = vld [vmem:[%s2994_s3 + $0x10] sm:$0xff]  ;;  %v1596_v2 = vld [vmem:[%s2994_s3 + $0x8] sm:$0xff]  ;;  %v1536_v58 = vmov 0   ;;  %vm3061_vm1 = vcmask 261120  }
  0x10   :  { %v510_v3 = vsel %vm3062_vm0, %v1586_v0, -inf  ;;  %v516_v4 = vsel %vm3062_vm0, %v1591_v1, -inf  ;;  %v1605_v5 = vld [vmem:[%s2994_s3 + $0x18] sm:$0xff]  ;;  %v513_v6 = vsel %vm3062_vm0, %v1596_v2, -inf  ;;  %v1614_v8 = vld [vmem:[%s2994_s3 + $0x20] sm:$0xff]  ;;  %v1619_v9 = vld [vmem:[%s2994_s3 + $0x28] sm:$0xff]  ;;  %1334 = vset.pattern.permute.xlu0 %v1536_v58  ;;  %1335 = vset.pattern.permute.xlu1 %v1536_v58 }
  0x11   :  { %511 = vmax.xlane.f32.xlu0 %v510_v3  ;;  %517 = vmax.xlane.f32.xlu1 %v516_v4  ;;  %v519_v7 = vsel %vm3062_vm0, %v1605_v5, -inf  ;;  %v522_v10 = vsel %vm3062_vm0, %v1614_v8, -inf  ;;  %v525_v11 = vsel %vm3062_vm0, %v1619_v9, -inf  ;;  %v1628_v12 = vld [vmem:[%s2994_s3 + $0x30] sm:$0xff]  ;;  %v1633_v13 = vld [vmem:[%s2994_s3 + $0x38] sm:$0xff]  ;;  %v1642_v16 = vld [vmem:[%s2994_s3 + $0x40] sm:$0xff] }
  0x12   :  { %v528_v14 = vsel %vm3062_vm0, %v1628_v12, -inf  ;;  %v531_v15 = vsel %vm3062_vm0, %v1633_v13, -inf  ;;  %v1647_v17 = vld [vmem:[%s2994_s3 + $0x48] sm:$0xff]  ;;  %v534_v18 = vsel %vm3062_vm0, %v1642_v16, -inf  ;;  %v1656_v20 = vld [vmem:[%s2994_s3 + $0x58] sm:$0xff]  ;;  %v1661_v21 = vld [vmem:[%s2994_s3 + $0x50] sm:$0xff] }
  0x13   :  { %v537_v19 = vsel %vm3062_vm0, %v1647_v17, -inf  ;;  %v543_v22 = vsel %vm3062_vm0, %v1656_v20, -inf  ;;  %v540_v23 = vsel %vm3062_vm0, %v1661_v21, -inf  ;;  %v1670_v24 = vld [vmem:[%s2994_s3 + $0x68] sm:$0xff]  ;;  %v1675_v25 = vld [vmem:[%s2994_s3 + $0x60] sm:$0xff]  ;;  %v1684_v28 = vld [vmem:[%s2994_s3 + $0x78] sm:$0xff] }
  0x14   :  { %v549_v26 = vsel %vm3062_vm0, %v1670_v24, -inf  ;;  %v546_v27 = vsel %vm3062_vm0, %v1675_v25, -inf  ;;  %v1689_v29 = vld [vmem:[%s2994_s3 + $0x70] sm:$0xff]  ;;  %v555_v30 = vsel %vm3062_vm0, %v1684_v28, -inf  ;;  %v1698_v32 = vld [vmem:[%s2994_s3 + $0x88] sm:$0xff]  ;;  %v1703_v33 = vld [vmem:[%s2994_s3 + $0x80] sm:$0xff] }
  0x15   :  { %514 = vmax.xlane.f32.xlu0 %v513_v6  ;;  %520 = vmax.xlane.f32.xlu1 %v519_v7  ;;  %v552_v31 = vsel %vm3062_vm0, %v1689_v29, -inf  ;;  %v561_v34 = vsel %vm3062_vm0, %v1698_v32, -inf  ;;  %v558_v35 = vsel %vm3062_vm0, %v1703_v33, -inf  ;;  %v1712_v36 = vld [vmem:[%s2994_s3 + $0x98] sm:$0xff]  ;;  %v1717_v37 = vld [vmem:[%s2994_s3 + $0x90] sm:$0xff]  ;;  %v1726_v40 = vld [vmem:[%s2994_s3 + $0xa8] sm:$0xff] }
  0x16   :  { %v567_v38 = vsel %vm3062_vm0, %v1712_v36, -inf  ;;  %v564_v39 = vsel %vm3062_vm0, %v1717_v37, -inf  ;;  %v1731_v41 = vld [vmem:[%s2994_s3 + $0xa0] sm:$0xff]  ;;  %v573_v42 = vsel %vm3062_vm0, %v1726_v40, -inf  ;;  %v1740_v44 = vld [vmem:[%s2994_s3 + $0xb0] sm:$0xff]  ;;  %v1745_v45 = vld [vmem:[%s2994_s3 + $0xb8] sm:$0xff] }
  0x17   :  { %v570_v43 = vsel %vm3062_vm0, %v1731_v41, -inf  ;;  %v576_v46 = vsel %vm3062_vm0, %v1740_v44, -inf  ;;  %v579_v47 = vsel %vm3062_vm0, %v1745_v45, -inf  ;;  %v1754_v48 = vld [vmem:[%s2994_s3 + $0xc0] sm:$0xff]  ;;  %v1759_v49 = vld [vmem:[%s2994_s3 + $0xc8] sm:$0xff]  ;;  %v1768_v52 = vld [vmem:[%s2994_s3 + $0xd0] sm:$0xff] }
  0x18   :  { %v582_v50 = vsel %vm3062_vm0, %v1754_v48, -inf  ;;  %v585_v51 = vsel %vm3062_vm0, %v1759_v49, -inf  ;;  %3103 = vst [vmem:[#allocation8_spill] sm:$0xff] %v1768_v52  ;;  %v1773_v53 = vld [vmem:[%s2994_s3 + $0xd8] sm:$0xff]  ;;  %v588_v54 = vsel %vm3062_vm0, %v1768_v52, -inf  ;;  %v1782_v56 = vld [vmem:[%s2994_s3 + $0xe0] sm:$0xff] }
  0x19   :  { %523 = vmax.xlane.f32.xlu0 %v522_v10  ;;  %526 = vmax.xlane.f32.xlu1 %v525_v11  ;;  %3104 = vst [vmem:[#allocation9_spill] sm:$0xff] %v1773_v53  ;;  %v591_v55 = vsel %vm3062_vm0, %v1773_v53, -inf  ;;  %3105 = vst [vmem:[#allocation10_spill] sm:$0xff] %v1782_v56  ;;  %v1787_v57 = vld [vmem:[%s2994_s3 + $0xe8] sm:$0xff]  ;;  %v594_v59 = vsel %vm3062_vm0, %v1782_v56, -inf  ;;  %v1796_v61 = vld [vmem:[%s2994_s3 + $0xf0] sm:$0xff] }
  0x1a   :  { %3106 = vst [vmem:[#allocation11_spill] sm:$0xff] %v1787_v57  ;;  %v597_v60 = vsel %vm3062_vm0, %v1787_v57, -inf  ;;  %3107 = vst [vmem:[#allocation12_spill] sm:$0xff] %v1796_v61  ;;  %v1801_v62 = vld [vmem:[%s2994_s3 + $0xf8] sm:$0xff]  ;;  %v600_v63 = vsel %vm3062_vm0, %v1796_v61, -inf  ;;  %v1810_v4 = vld [vmem:[%s2992_s1] sm:$0xff] }
  0x1b   :  { %3108 = vst [vmem:[#allocation13_spill] sm:$0xff] %v1801_v62  ;;  %v603_v3 = vsel %vm3062_vm0, %v1801_v62, -inf  ;;  %3109 = vst [vmem:[#allocation14_spill] sm:$0xff] %v1810_v4  ;;  %v1166_v6 = vld [vmem:[%s2996_s5] sm:$0xff]  ;;  %v56_v7 = vsel %vm3061_vm1, %v1810_v4, -inf  ;;  %s1538_s10 = smov 1.0  }
  0x1c   :  { %v1179_v10 = vsel %vm3062_vm0, %v1166_v6, -inf  ;;  %v2061_v62 = vld [vmem:[%s2995_s4 + $0xe0] sm:$0xff]  ;;  %s1230_s18 = sld [smem:[#allocation2]] }
  0x1d   :  { %529 = vmax.xlane.f32.xlu0 %v528_v14  ;;  %532 = vmax.xlane.f32.xlu1 %v531_v15  ;;  %3138 = vst [vmem:[#allocation43_spill] sm:$0xff] %v2061_v62  ;;  %s1308_s19 = sld [smem:[#allocation2 + $0x3]] }
  0x1e   :  { %s1306_s21 = sld [smem:[#allocation2 + $0x1]] }
  0x1f   :  { %s1309_s23 = sld [smem:[#allocation2 + $0x4]] }
  0x20   :  { %s1307_s24 = sld [smem:[#allocation2 + $0x2]] }
  0x21   :  { %535 = vmax.xlane.f32.xlu0 %v534_v18  ;;  %538 = vmax.xlane.f32.xlu1 %v537_v19  ;;  %s1310_s26 = sld [smem:[#allocation2 + $0x5]] }
  0x25   :  { %544 = vmax.xlane.f32.xlu1 %v543_v22  ;;  %541 = vmax.xlane.f32.xlu0 %v540_v23 }
  0x29   :  { %550 = vmax.xlane.f32.xlu1 %v549_v26  ;;  %547 = vmax.xlane.f32.xlu0 %v546_v27 }
  0x2d   :  { %556 = vmax.xlane.f32.xlu1 %v555_v30  ;;  %553 = vmax.xlane.f32.xlu0 %v552_v31 }
  0x31   :  { %562 = vmax.xlane.f32.xlu1 %v561_v34  ;;  %559 = vmax.xlane.f32.xlu0 %v558_v35 }
  0x35   :  { %568 = vmax.xlane.f32.xlu1 %v567_v38  ;;  %565 = vmax.xlane.f32.xlu0 %v564_v39 }
  0x39   :  { %574 = vmax.xlane.f32.xlu1 %v573_v42  ;;  %571 = vmax.xlane.f32.xlu0 %v570_v43 }
  0x3d   :  { %577 = vmax.xlane.f32.xlu1 %v576_v46  ;;  %580 = vmax.xlane.f32.xlu0 %v579_v47 }
  0x41   :  { %583 = vmax.xlane.f32.xlu1 %v582_v50  ;;  %586 = vmax.xlane.f32.xlu0 %v585_v51 }
  0x45   :  { %589 = vmax.xlane.f32.xlu1 %v588_v54  ;;  %592 = vmax.xlane.f32.xlu0 %v591_v55 }
  0x49   :  { %595 = vmax.xlane.f32.xlu1 %v594_v59  ;;  %598 = vmax.xlane.f32.xlu0 %v597_v60 }
  0x4d   :  { %601 = vmax.xlane.f32.xlu1 %v600_v63  ;;  %604 = vmax.xlane.f32.xlu0 %v603_v3 }
  0x51   :  { %57 = vmax.xlane.f32.xlu1 %v56_v7  ;;  %1180 = vmax.xlane.f32.xlu0 %v1179_v10 }
  0x9a   :  { %v1818_v11 = vpop.xlane.xlu0 %511  ;;  %v1820_v14 = vpop.xlane.xlu1 %517 }
  0x9b   :  { %3110 = vst [vmem:[#allocation15_spill] sm:$0xff] %v1818_v11  ;;  %3111 = vst [vmem:[#allocation16_spill] sm:$0xff] %v1820_v14  ;;  %v606_v15 = vsub.f32 %v1586_v0, %v1818_v11  ;;  %v608_v18 = vsub.f32 %v1591_v1, %v1820_v14  ;;  %v2015_v11 = vld [vmem:[%s2995_s4 + $0xa0] sm:$0xff] }
  0x9c   :  { %3133 = vst [vmem:[#allocation38_spill] sm:$0xff] %v2015_v11 }
  0x9d   :  { %v638_v19 = vmul.f32 1.442695, %v606_v15  ;;  %v642_v22 = vmul.f32 1.442695, %v608_v18 }
  0x9e   :  { %v1826_v23 = vpop.xlane.xlu0 %514  ;;  %v1828_v26 = vpop.xlane.xlu1 %520 }
  0x9f   :  { %3112 = vst [vmem:[#allocation17_spill] sm:$0xff] %v1826_v23  ;;  %3113 = vst [vmem:[#allocation18_spill] sm:$0xff] %v1828_v26  ;;  %1336 = vpow2.f32 %v638_v19  ;;  %v607_v27 = vsub.f32 %v1596_v2, %v1826_v23  ;;  %v609_v30 = vsub.f32 %v1605_v5, %v1828_v26  ;;  %v2023_v23 = vld [vmem:[%s2995_s4 + $0xa8] sm:$0xff] }
  0xa0   :  { %1338 = vpow2.f32 %v642_v22  ;;  %3134 = vst [vmem:[#allocation39_spill] sm:$0xff] %v2023_v23 }
  0xa1   :  { %v640_v31 = vmul.f32 1.442695, %v607_v27  ;;  %v644_v34 = vmul.f32 1.442695, %v609_v30 }
  0xa2   :  { %v1834_v35 = vpop.xlane.xlu0 %523  ;;  %v1836_v38 = vpop.xlane.xlu1 %526 }
  0xa3   :  { %3114 = vst [vmem:[#allocation19_spill] sm:$0xff] %v1834_v35  ;;  %3115 = vst [vmem:[#allocation20_spill] sm:$0xff] %v1836_v38  ;;  %1340 = vpow2.f32 %v640_v31  ;;  %v610_v39 = vsub.f32 %v1614_v8, %v1834_v35  ;;  %v611_v42 = vsub.f32 %v1619_v9, %v1836_v38  ;;  %v41_v35 = vld [vmem:[%s2993_s2] sm:$0xff] }
  0xa4   :  { %1342 = vpow2.f32 %v644_v34 }
  0xa5   :  { %v646_v43 = vmul.f32 1.442695, %v610_v39  ;;  %v648_v46 = vmul.f32 1.442695, %v611_v42 }
  0xa6   :  { %v1842_v47 = vpop.xlane.xlu0 %529  ;;  %v1844_v50 = vpop.xlane.xlu1 %532 }
  0xa7   :  { %3116 = vst [vmem:[#allocation21_spill] sm:$0xff] %v1842_v47  ;;  %3117 = vst [vmem:[#allocation22_spill] sm:$0xff] %v1844_v50  ;;  %1344 = vpow2.f32 %v646_v43  ;;  %v612_v51 = vsub.f32 %v1628_v12, %v1842_v47  ;;  %v613_v54 = vsub.f32 %v1633_v13, %v1844_v50  ;;  %v1991_v47 = vld [vmem:[%s2995_s4 + $0x90] sm:$0xff] }
  0xa8   :  { %1346 = vpow2.f32 %v648_v46  ;;  %3131 = vst [vmem:[#allocation36_spill] sm:$0xff] %v1991_v47 }
  0xa9   :  { %v650_v55 = vmul.f32 1.442695, %v612_v51  ;;  %v652_v58 = vmul.f32 1.442695, %v613_v54 }
  0xaa   :  { %v1850_v59 = vpop.xlane.xlu0 %535 }
  0xab   :  { %3118 = vst [vmem:[#allocation23_spill] sm:$0xff] %v1850_v59  ;;  %1348 = vpow2.f32 %v650_v55  ;;  %v614_v60 = vsub.f32 %v1642_v16, %v1850_v59  ;;  %v1866_v55 = vld [vmem:[%s2995_s4] sm:$0xff] }
  0xac   :  { %v1337_v63 = vpop.eup %1336  ;;  %1350 = vpow2.f32 %v652_v58  ;;  %v1872_v58 = vld [vmem:[%s2995_s4 + $0x8] sm:$0xff]  ;;  %v1980_v59 = vld [vmem:[%s2995_s4 + $0x80] sm:$0xff]  ;;  %vm157_vm12 = vcmp.ge.s32.totalorder %v1866_v55, 0  ;;  %vm189_vm13 = vcmp.lt.s32.totalorder %v1866_v55, 64 }
  0xad   :  { %v1339_v3 = vpop.eup %1338  ;;  %v654_v6 = vmul.f32 1.442695, %v614_v60  ;;  %v702_v7 = vsel %vm3062_vm0, %v1337_v63, 0.0  ;;  %v1877_v60 = vld [vmem:[%s2995_s4 + $0x10] sm:$0xff]  ;;  %v1884_v63 = vld [vmem:[%s2995_s4 + $0x18] sm:$0xff]  ;;  %3129 = vst [vmem:[#allocation34_spill] sm:$0xff] %v1980_v59 }
  0xae   :  { %703 = vadd.xlane.f32.xlu1 %v702_v7  ;;  %v708_v10 = vsel %vm3062_vm0, %v1339_v3, 0.0  ;;  %v1889_v3 = vld [vmem:[%s2995_s4 + $0x20] sm:$0xff]  ;;  %v1901_v7 = vld [vmem:[%s2995_s4 + $0x30] sm:$0xff]  ;;  %vm158_vm14 = vcmp.ge.s32.totalorder %v1872_v58, 0  ;;  %vm190_vm15 = vcmp.lt.s32.totalorder %v1872_v58, 64 }
  0xaf   :  { %1352 = vpow2.f32 %v654_v6  ;;  %v1896_v6 = vld [vmem:[%s2995_s4 + $0x28] sm:$0xff] }
  0xb0   :  { %v1341_v15 = vpop.eup %1340 }
  0xb1   :  { %v1343_v18 = vpop.eup %1342  ;;  %v705_v19 = vsel %vm3062_vm0, %v1341_v15, 0.0  ;;  %v1913_v15 = vld [vmem:[%s2995_s4 + $0x40] sm:$0xff] }
  0xb2   :  { %706 = vadd.xlane.f32.xlu0 %v705_v19  ;;  %709 = vadd.xlane.f32.xlu1 %v708_v10  ;;  %v711_v22 = vsel %vm3062_vm0, %v1343_v18, 0.0  ;;  %v1908_v10 = vld [vmem:[%s2995_s4 + $0x38] sm:$0xff]  ;;  %v1920_v18 = vld [vmem:[%s2995_s4 + $0x48] sm:$0xff]  ;;  %v1925_v19 = vld [vmem:[%s2995_s4 + $0x50] sm:$0xff] }
  0xb3   :  { %3119 = vst [vmem:[#allocation24_spill] sm:$0xff] %v1925_v19 }
  0xb4   :  { %v1345_v27 = vpop.eup %1344 }
  0xb5   :  { %v1347_v30 = vpop.eup %1346  ;;  %v714_v31 = vsel %vm3062_vm0, %v1345_v27, 0.0  ;;  %v1937_v27 = vld [vmem:[%s2995_s4 + $0x60] sm:$0xff] }
  0xb6   :  { %712 = vadd.xlane.f32.xlu0 %v711_v22  ;;  %715 = vadd.xlane.f32.xlu1 %v714_v31  ;;  %v717_v34 = vsel %vm3062_vm0, %v1347_v30, 0.0  ;;  %v1932_v22 = vld [vmem:[%s2995_s4 + $0x58] sm:$0xff]  ;;  %3121 = vst [vmem:[#allocation26_spill] sm:$0xff] %v1937_v27  ;;  %v1944_v30 = vld [vmem:[%s2995_s4 + $0x68] sm:$0xff] }
  0xb7   :  { %3120 = vst [vmem:[#allocation25_spill] sm:$0xff] %v1932_v22  ;;  %3122 = vst [vmem:[#allocation27_spill] sm:$0xff] %v1944_v30  ;;  %v1949_v31 = vld [vmem:[%s2995_s4 + $0x88] sm:$0xff] }
  0xb8   :  { %v1349_v39 = vpop.eup %1348  ;;  %3123 = vst [vmem:[#allocation28_spill] sm:$0xff] %v1949_v31 }
  0xb9   :  { %v1351_v42 = vpop.eup %1350  ;;  %v720_v43 = vsel %vm3062_vm0, %v1349_v39, 0.0  ;;  %v1958_v39 = vld [vmem:[%s2995_s4 + $0x70] sm:$0xff] }
  0xba   :  { %721 = vadd.xlane.f32.xlu0 %v720_v43  ;;  %718 = vadd.xlane.f32.xlu1 %v717_v34  ;;  %v723_v46 = vsel %vm3062_vm0, %v1351_v42, 0.0  ;;  %v1951_v34 = vpop.xlane.xlu1 %538  ;;  %3125 = vst [vmem:[#allocation30_spill] sm:$0xff] %v1958_v39  ;;  %v148_v42 = vld [vmem:[%s2995_s4 + $0xb8] sm:$0xff] }
  0xbb   :  { %3124 = vst [vmem:[#allocation29_spill] sm:$0xff] %v1951_v34 }
  0xbc   :  { %v1353_v51 = vpop.eup %1352 }
  0xbd   :  { %v726_v54 = vsel %vm3062_vm0, %v1353_v51, 0.0  ;;  %v150_v51 = vld [vmem:[%s2995_s4 + $0xc8] sm:$0xff] }
  0xbe   :  { %724 = vadd.xlane.f32.xlu1 %v723_v46  ;;  %v1964_v43 = vpop.xlane.xlu1 %544  ;;  %v1969_v46 = vld [vmem:[%s2995_s4 + $0x78] sm:$0xff] }
  0xbf   :  { %3126 = vst [vmem:[#allocation31_spill] sm:$0xff] %v1964_v43  ;;  %3127 = vst [vmem:[#allocation32_spill] sm:$0xff] %v1969_v46 }
  0xc2   :  { %727 = vadd.xlane.f32.xlu1 %v726_v54  ;;  %v1975_v54 = vpop.xlane.xlu0 %541  ;;  %v1985_v50 = vpop.xlane.xlu1 %550 }
  0xc3   :  { %3128 = vst [vmem:[#allocation33_spill] sm:$0xff] %v1975_v54  ;;  %3130 = vst [vmem:[#allocation35_spill] sm:$0xff] %v1985_v50 }
  0xc6   :  { %v1996_v26 = vpop.xlane.xlu0 %547  ;;  %v1999_v38 = vpop.xlane.xlu1 %556 }
  0xca   :  { %v2010_v14 = vpop.xlane.xlu0 %553 }
  0xd0   :  { %254 = vperm.xlu0 %1334, %v1866_v55  }
  0xd3   :  { %257 = vperm.xlu1 %1335, %v1872_v58  }
  0xd4   :  { %260 = vperm.xlu0 %1334, %v1877_v60  }
  0xd7   :  { %263 = vperm.xlu1 %1335, %v1884_v63  }
  0xd8   :  { %266 = vperm.xlu0 %1334, %v1889_v3  }
  0xdb   :  { %269 = vperm.xlu1 %1335, %v1896_v6  }
  0xdc   :  { %272 = vperm.xlu0 %1334, %v1901_v7  }
  0xdf   :  { %275 = vperm.xlu1 %1335, %v1908_v10  }
  0xe0   :  { %278 = vperm.xlu0 %1334, %v1913_v15  }
  0xe3   :  { %281 = vperm.xlu1 %1335, %v1920_v18  }
  0xe4   :  { %284 = vperm.xlu0 %1334, %v1925_v19  }
  0xe7   :  { %287 = vperm.xlu1 %1335, %v1932_v22  }
  0xe8   :  { %290 = vperm.xlu0 %1334, %v1937_v27   ;;  %v1167_v27 = vld [vmem:[%s2997_s6] sm:$0xff] }
  0xeb   :  { %293 = vperm.xlu1 %1335, %v1944_v30  }
  0xec   :  { %305 = vperm.xlu0 %1334, %v1949_v31   ;;  %v2035_v31 = vld [vmem:[%s2995_s4 + $0xb0] sm:$0xff] }
  0xed   :  { %3135 = vst [vmem:[#allocation40_spill] sm:$0xff] %v2035_v31 }
  0xef   :  { %296 = vperm.xlu1 %1335, %v1958_v39  }
  0xf0   :  { %323 = vperm.xlu0 %1334, %v148_v42   ;;  %v151_v42 = vld [vmem:[%s2995_s4 + $0xd0] sm:$0xff] }
  0xf3   :  { %299 = vperm.xlu1 %1335, %v1969_v46   ;;  %v2043_v46 = vld [vmem:[%s2995_s4 + $0xc0] sm:$0xff] }
  0xf4   :  { %329 = vperm.xlu0 %1334, %v150_v51   ;;  %v154_v51 = vld [vmem:[%s2995_s4 + $0xe8] sm:$0xff]  ;;  %3136 = vst [vmem:[#allocation41_spill] sm:$0xff] %v2043_v46 }
  0xf7   :  { %302 = vperm.xlu1 %1335, %v1980_v59  }
  0xf8   :  { %332 = vperm.xlu0 %1334, %v151_v42   ;;  %v2004_v42 = vld [vmem:[%s2995_s4 + $0x98] sm:$0xff] }
  0xf9   :  { %3132 = vst [vmem:[#allocation37_spill] sm:$0xff] %v2004_v42 }
  0xfb   :  { %308 = vperm.xlu1 %1335, %v1991_v47   ;;  %v2025_v47 = vpop.xlane.xlu0 %559 }
  0xfc   :  { %341 = vperm.xlu0 %1334, %v154_v51   ;;  %v2017_v51 = vpop.xlane.xlu1 %562 }
  0xff   :  { %311 = vperm.xlu1 %1335, %v2004_v42   ;;  %v615_v42 = vsub.f32 %v1647_v17, %v1951_v34  ;;  %v2038_v59 = vpop.xlane.xlu0 %565 }
 0x100   :  { %48 = vperm.xlu0 %1334, %v41_v35   ;;  %v2030_v35 = vpop.xlane.xlu1 %568 }
 0x103   :  { %314 = vperm.xlu1 %1335, %v2015_v11   ;;  %v656_v11 = vmul.f32 1.442695, %v615_v42  ;;  %v2053_v42 = vpop.xlane.xlu0 %571 }
 0x104   :  { %v2045_v34 = vpop.xlane.xlu1 %574 }
 0x105   :  { %1354 = vpow2.f32 %v656_v11 }
 0x107   :  { %317 = vperm.xlu1 %1335, %v2023_v23   ;;  %v2051_v23 = vld [vmem:[%s2995_s4 + $0xd8] sm:$0xff]  ;;  %v2064_v11 = vpop.xlane.xlu0 %580 }
 0x108   :  { %3137 = vst [vmem:[#allocation42_spill] sm:$0xff] %v2051_v23  ;;  %3139 = vst [vmem:[#allocation44_spill] sm:$0xff] %v2064_v11 }
 0x10b   :  { %320 = vperm.xlu1 %1335, %v2035_v31   ;;  %v2056_v31 = vpop.xlane.xlu1 %577  ;;  %v2076_v30 = vpop.xlane.xlu0 %586 }
 0x10c   :  { %3141 = vst [vmem:[#allocation46_spill] sm:$0xff] %v2076_v30 }
 0x10f   :  { %326 = vperm.xlu1 %1335, %v2043_v46   ;;  %v155_v46 = vld [vmem:[%s2995_s4 + $0xf0] sm:$0xff]  ;;  %v2069_v39 = vpop.xlane.xlu1 %583 }
 0x112   :  { %v1355_v61 = vpop.eup %1354 }
 0x113   :  { %335 = vperm.xlu1 %1335, %v2051_v23   ;;  %v2074_v23 = vld [vmem:[%s2995_s4 + $0xf8] sm:$0xff]  ;;  %v729_v57 = vsel %vm3062_vm0, %v1355_v61, 0.0 }
 0x114   :  { %3140 = vst [vmem:[#allocation45_spill] sm:$0xff] %v2074_v23 }
 0x117   :  { %338 = vperm.xlu1 %1335, %v2061_v62   ;;  %v2080_v62 = vpop.xlane.xlu1 %589 }
 0x118   :  { %3142 = vst [vmem:[#allocation47_spill] sm:$0xff] %v2080_v62 }
 0x11b   :  { %344 = vperm.xlu1 %1335, %v155_v46   ;;  %v2085_v46 = vpop.xlane.xlu0 %592  ;;  %v2087_v56 = vpop.xlane.xlu1 %595 }
 0x11c   :  { %3143 = vst [vmem:[#allocation48_spill] sm:$0xff] %v2085_v46  ;;  %3144 = vst [vmem:[#allocation49_spill] sm:$0xff] %v2087_v56 }
 0x11f   :  { %730 = vadd.xlane.f32.xlu0 %v729_v57  ;;  %347 = vperm.xlu1 %1335, %v2074_v23   ;;  %v2089_v22 = vpop.xlane.xlu0 %598  ;;  %v2091_v4 = vpop.xlane.xlu1 %601 }
 0x120   :  { %3145 = vst [vmem:[#allocation50_spill] sm:$0xff] %v2089_v22  ;;  %3146 = vst [vmem:[#allocation51_spill] sm:$0xff] %v2091_v4 }
 0x123   :  { %1172 = vperm.xlu1 %1335, %v1167_v27   ;;  %v2093_v53 = vpop.xlane.xlu0 %604  ;;  %v2095_v57 = vpop.xlane.xlu1 %57  ;;  %v616_v27 = vsub.f32 %v1661_v21, %v1975_v54 }
 0x124   :  { %3147 = vst [vmem:[#allocation52_spill] sm:$0xff] %v2093_v53  ;;  %3148 = vst [vmem:[#allocation53_spill] sm:$0xff] %v2095_v57  ;;  %v45_v53 = vlaneseq }
 0x125   :  { %v658_v4 = vmul.f32 1.442695, %v616_v27 }
 0x127   :  { %v2097_v61 = vpop.xlane.xlu0 %1180  ;;  %1356 = vpow2.f32 %v658_v4 }
 0x128   :  { %3149 = vst [vmem:[#allocation54_spill] sm:$0xff] %v2097_v61  ;;  %v617_v61 = vsub.f32 %v1656_v20, %v1964_v43 }
 0x12a   :  { %v660_v57 = vmul.f32 1.442695, %v617_v61 }
 0x12c   :  { %1358 = vpow2.f32 %v660_v57 }
 0x137   :  { %v2099_v23 = vpop.xlane.xlu1 %703 }
 0x138   :  { %3150 = vst [vmem:[#allocation55_spill] sm:$0xff] %v2099_v23 }
 0x13b   :  { %v2101_v19 = vpop.xlane.xlu0 %706  ;;  %v2103_v52 = vpop.xlane.xlu1 %709 }
 0x13c   :  { %3151 = vst [vmem:[#allocation56_spill] sm:$0xff] %v2101_v19  ;;  %3152 = vst [vmem:[#allocation57_spill] sm:$0xff] %v2103_v52  ;;  %v2119_v52 = vand.u32 127, %v45_v53  ;;  %v619_v53 = vsub.f32 %v1670_v24, %v1985_v50 }
 0x13e   :  { %3156 = vst [vmem:[#allocation61_spill] sm:$0xff] %v2119_v52 }
 0x13f   :  { %v2107_v56 = vpop.xlane.xlu1 %715  ;;  %v2109_v22 = vpop.xlane.xlu0 %712 }
 0x143   :  { %v2111_v46 = vpop.xlane.xlu1 %718  ;;  %v2115_v23 = vpop.xlane.xlu0 %721 }
 0x144   :  { %3153 = vst [vmem:[#allocation58_spill] sm:$0xff] %v2111_v46  ;;  %3154 = vst [vmem:[#allocation59_spill] sm:$0xff] %v2115_v23  ;;  %v618_v46 = vsub.f32 %v1675_v25, %v1996_v26 }
 0x147   :  { %v2117_v19 = vpop.xlane.xlu1 %724 }
 0x148   :  { %3155 = vst [vmem:[#allocation60_spill] sm:$0xff] %v2117_v19 }
 0x14b   :  { %v255_v54 = vpop.permute.xlu0 %254  ;;  %v2121_v62 = vpop.xlane.xlu1 %727 }
 0x14c   :  { %3157 = vst [vmem:[#allocation62_spill] sm:$0xff] %v2121_v62  ;;  %vm349_vm2 = vcmp.eq.s32.totalorder %v2119_v52, %v255_v54  ;;  %v662_v62 = vmul.f32 1.442695, %v618_v46 }
 0x14d   :  { %v381_v27 = vsel %vm349_vm2, %v1586_v0, 0.0  ;;  %v1357_v0 = vpop.eup %1356 }
 0x14e   :  { %v414_v4 = vsel %vm3062_vm0, %v381_v27, 0.0  ;;  %v664_v27 = vmul.f32 1.442695, %v619_v53  ;;  %1360 = vpow2.f32 %v662_v62  ;;  %v732_v46 = vsel %vm3062_vm0, %v1357_v0, 0.0 }
 0x14f   :  { %v261_v43 = vpop.permute.xlu0 %260  ;;  %415 = vadd.xlane.f32.xlu1 %v414_v4  ;;  %v258_v23 = vpop.permute.xlu1 %257 }
 0x150   :  { %vm350_vm3 = vcmp.eq.s32.totalorder %v2119_v52, %v258_v23  ;;  %vm351_vm4 = vcmp.eq.s32.totalorder %v2119_v52, %v261_v43  ;;  %v620_v23 = vsub.f32 %v1689_v29, %v2010_v14  ;;  %1362 = vpow2.f32 %v664_v27 }
 0x151   :  { %v382_v61 = vsel %vm350_vm3, %v1596_v2, 0.0  ;;  %v383_v50 = vsel %vm351_vm4, %v1591_v1, 0.0  ;;  %vm2182_vm3 = vmand %vm157_vm12, %vm189_vm13  ;;  %vm159_vm4 = vcmp.ge.s32.totalorder %v1877_v60, 0  ;;  %vm193_vm12 = vcmp.lt.s32.totalorder %v1889_v3, 64 }
 0x152   :  { %v417_v54 = vsel %vm3062_vm0, %v382_v61, 0.0  ;;  %v666_v43 = vmul.f32 1.442695, %v620_v23  ;;  %v420_v53 = vsel %vm3062_vm0, %v383_v50, 0.0  ;;  %vm160_vm13 = vcmp.ge.s32.totalorder %v1884_v63, 0 }
 0x153   :  { %v267_v57 = vpop.permute.xlu0 %266  ;;  %418 = vadd.xlane.f32.xlu0 %v417_v54  ;;  %v264_v19 = vpop.permute.xlu1 %263 }
 0x154   :  { %vm353_vm5 = vcmp.eq.s32.totalorder %v2119_v52, %v267_v57  ;;  %v1359_v57 = vpop.eup %1358  ;;  %vm352_vm8 = vcmp.eq.s32.totalorder %v2119_v52, %v264_v19  ;;  %1364 = vpow2.f32 %v666_v43  ;;  %v623_v19 = vsub.f32 %v1698_v32, %v2017_v51 }
 0x155   :  { %v385_v4 = vsel %vm353_vm5, %v1614_v8, 0.0  ;;  %v621_v8 = vsub.f32 %v1684_v28, %v1999_v38  ;;  %v735_v50 = vsel %vm3062_vm0, %v1359_v57, 0.0  ;;  %vm2189_vm5 = vmand %vm158_vm14, %vm190_vm15  ;;  %vm192_vm14 = vcmp.lt.s32.totalorder %v1884_v63, 64 }
 0x156   :  { %v426_v2 = vsel %vm3062_vm0, %v385_v4, 0.0  ;;  %v672_v57 = vmul.f32 1.442695, %v623_v19  ;;  %v1537_v19 = vmov 0.0   ;;  %vm162_vm15 = vcmp.ge.s32.totalorder %v1896_v6, 0 }
 0x157   :  { %v273_v61 = vpop.permute.xlu0 %272  ;;  %427 = vadd.xlane.f32.xlu1 %v426_v2  ;;  %733 = vadd.xlane.f32.xlu0 %v732_v46  ;;  %v270_v54 = vpop.permute.xlu1 %269  ;;  %v668_v2 = vmul.f32 1.442695, %v621_v8 }
 0x158   :  { %vm355_vm6 = vcmp.eq.s32.totalorder %v2119_v52, %v273_v61  ;;  %vm354_vm7 = vcmp.eq.s32.totalorder %v2119_v52, %v270_v54  ;;  %v384_v61 = vsel %vm352_vm8, %v1605_v5, 0.0  ;;  %v624_v5 = vsub.f32 %v1717_v37, %v2038_v59 }
 0x159   :  { %v386_v62 = vsel %vm354_vm7, %v1619_v9, 0.0  ;;  %v387_v1 = vsel %vm355_vm6, %v1628_v12, 0.0  ;;  %v622_v9 = vsub.f32 %v1703_v33, %v2025_v47  ;;  %1366 = vpow2.f32 %v668_v2 }
 0x15a   :  { %v429_v0 = vsel %vm3062_vm0, %v386_v62, 0.0  ;;  %v432_v27 = vsel %vm3062_vm0, %v387_v1, 0.0  ;;  %v423_v8 = vsel %vm3062_vm0, %v384_v61, 0.0  ;;  %vm191_vm6 = vcmp.lt.s32.totalorder %v1877_v60, 64 }
 0x15b   :  { %421 = vadd.xlane.f32.xlu0 %v420_v53  ;;  %430 = vadd.xlane.f32.xlu1 %v429_v0  ;;  %v276_v4 = vpop.permute.xlu1 %275  ;;  %v279_v46 = vpop.permute.xlu0 %278  ;;  %v670_v54 = vmul.f32 1.442695, %v622_v9  ;;  %v625_v9 = vsub.f32 %v1712_v36, %v2030_v35  ;;  %vm3068_vm8 = vcmask 7168   ;;  %v627_v60 = vsub.f32 %v1726_v40, %v2045_v34 }
 0x15c   :  { %vm356_vm9 = vcmp.eq.s32.totalorder %v2119_v52, %v276_v4  ;;  %vm357_vm10 = vcmp.eq.s32.totalorder %v2119_v52, %v279_v46  ;;  %v1361_v43 = vpop.eup %1360 }
 0x15d   :  { %v388_v12 = vsel %vm356_vm9, %v1633_v13, 0.0  ;;  %v389_v53 = vsel %vm357_vm10, %v1642_v16, 0.0  ;;  %1368 = vpow2.f32 %v670_v54  ;;  %v738_v4 = vsel %vm3062_vm0, %v1361_v43, 0.0  ;;  %v1363_v16 = vpop.eup %1362  ;;  %vm2214_vm9 = vmand %vm159_vm4, %vm191_vm6 }
 0x15e   :  { %v435_v62 = vsel %vm3062_vm0, %v388_v12, 0.0  ;;  %v438_v1 = vsel %vm3062_vm0, %v389_v53, 0.0  ;;  %1370 = vpow2.f32 %v672_v57  ;;  %v1273_v54 = vsel %vm2182_vm3, 1.0, %v1537_v19 }
 0x15f   :  { %736 = vadd.xlane.f32.xlu0 %v735_v50  ;;  %433 = vadd.xlane.f32.xlu1 %v432_v27  ;;  %v282_v23 = vpop.permute.xlu1 %281  ;;  %v285_v13 = vpop.permute.xlu0 %284  ;;  %v674_v50 = vmul.f32 1.442695, %v624_v5  ;;  %v1094_v57 = vsel %vm3068_vm8, %v1273_v54, 0.0  ;;  %vm161_vm10 = vcmp.ge.s32.totalorder %v1889_v3, 0  ;;  %v3348_v3 = vld [vmem:[#allocation29_spill] sm:$0xff] }
 0x160   :  { %vm358_vm11 = vcmp.eq.s32.totalorder %v2119_v52, %v282_v23  ;;  %vm359_vm2 = vcmp.eq.s32.totalorder %v2119_v52, %v285_v13  ;;  %vm2245_vm6 = vmand %vm161_vm10, %vm193_vm12  ;;  %vm163_vm10 = vcmp.ge.s32.totalorder %v1901_v7, 0 }
 0x161   :  { %v390_v2 = vsel %vm358_vm11, %v1647_v17, 0.0  ;;  %v741_v17 = vsel %vm3062_vm0, %v1363_v16, 0.0  ;;  %v1365_v61 = vpop.eup %1364  ;;  %v391_v55 = vsel %vm359_vm2, %v1661_v21, 0.0  ;;  %1372 = vpow2.f32 %v674_v50 }
 0x162   :  { %v441_v58 = vsel %vm3062_vm0, %v390_v2, 0.0  ;;  %v626_v21 = vsub.f32 %v1731_v41, %v2053_v42  ;;  %v744_v5 = vsel %vm3062_vm0, %v1365_v61, 0.0  ;;  %v444_v13 = vsel %vm3062_vm0, %v391_v55, 0.0 }
 0x163   :  { %424 = vadd.xlane.f32.xlu0 %v423_v8  ;;  %436 = vadd.xlane.f32.xlu1 %v435_v62  ;;  %v288_v0 = vpop.permute.xlu1 %287  ;;  %v1274_v8 = vsel %vm2189_vm5, 1.0, %v1537_v19  ;;  %v676_v62 = vmul.f32 1.442695, %v625_v9  ;;  %v291_v43 = vpop.permute.xlu0 %290  ;;  %v1275_v2 = vsel %vm2214_vm9, 1.0, %v1537_v19  ;;  %vm194_vm2 = vcmp.lt.s32.totalorder %v1896_v6, 64 }
 0x164   :  { %vm360_vm7 = vcmp.eq.s32.totalorder %v2119_v52, %v288_v0  ;;  %vm361_vm11 = vcmp.eq.s32.totalorder %v2119_v52, %v291_v43  ;;  %vm2273_vm12 = vmand %vm162_vm15, %vm194_vm2  ;;  %vm164_vm15 = vcmp.ge.s32.totalorder %v1908_v10, 0  ;;  %vm196_vm2 = vcmp.lt.s32.totalorder %v1908_v10, 64 }
 0x165   :  { %1374 = vpow2.f32 %v676_v62  ;;  %v393_v55 = vsel %vm361_vm11, %v1675_v25, 0.0  ;;  %v628_v25 = vsub.f32 %v1740_v44, %v2056_v31  ;;  %vm195_vm11 = vcmp.lt.s32.totalorder %v1901_v7, 64 }
 0x166   :  { %v1367_v53 = vpop.eup %1366  ;;  %v450_v43 = vsel %vm3062_vm0, %v393_v55, 0.0  ;;  %v630_v7 = vsub.f32 %v1754_v48, %v2069_v39  ;;  %v631_v48 = vsub.f32 %v1759_v49, %v2076_v30  ;;  %v3174_v49 = vmov 0 }
 0x167   :  { %739 = vadd.xlane.f32.xlu0 %v738_v4  ;;  %439 = vadd.xlane.f32.xlu1 %v438_v1  ;;  %v2173_v46 = vpop.permute.xlu1 %293  ;;  %v1095_v4 = vsel %vm3068_vm8, %v1274_v8, 0.0  ;;  %v392_v1 = vsel %vm360_vm7, %v1656_v20, 0.0  ;;  %v678_v20 = vmul.f32 1.442695, %v626_v21  ;;  %v747_v50 = vsel %vm3062_vm0, %v1367_v53, 0.0  ;;  %vm2260_vm7 = vmand %vm160_vm13, %vm192_vm14  ;;  %v306_v10 = vpop.permute.xlu0 %305 }
 0x168   :  { %v1096_v9 = vadd.f32 %v1095_v4, %v1094_v57  ;;  %vm362_vm4 = vcmp.eq.s32.totalorder %v2119_v52, %v2173_v46  ;;  %v1277_v8 = vsel %vm2245_vm6, 1.0, %v1537_v19  ;;  %v680_v21 = vmul.f32 1.442695, %v627_v60  ;;  %vm2299_vm14 = vmand %vm163_vm10, %vm195_vm11 }
 0x169   :  { %1376 = vpow2.f32 %v678_v20  ;;  %v394_v53 = vsel %vm362_vm4, %v1670_v24, 0.0  ;;  %v1101_v24 = vsel %vm3068_vm8, %v1277_v8, 0.0  ;;  %v1278_v57 = vsel %vm2273_vm12, 1.0, %v1537_v19  ;;  %vm2318_vm10 = vmand %vm164_vm15, %vm196_vm2 }
 0x16a   :  { %v1369_v61 = vpop.eup %1368  ;;  %v682_v6 = vmul.f32 1.442695, %v628_v25  ;;  %1378 = vpow2.f32 %v680_v21  ;;  %v453_v20 = vsel %vm3062_vm0, %v394_v53, 0.0  ;;  %vm165_vm11 = vcmp.ge.s32.totalorder %v1913_v15, 0 }
 0x16b   :  { %742 = vadd.xlane.f32.xlu0 %v741_v17  ;;  %442 = vadd.xlane.f32.xlu1 %v441_v58  ;;  %v2195_v12 = vpop.permute.xlu1 %296  ;;  %v447_v17 = vsel %vm3062_vm0, %v392_v1, 0.0  ;;  %v1097_v58 = vsel %vm3068_vm8, %v1275_v2, 0.0  ;;  %v750_v46 = vsel %vm3062_vm0, %v1369_v61, 0.0  ;;  %v1371_v44 = vpop.eup %1370  ;;  %v629_v1 = vsub.f32 %v1745_v45, %v2064_v11 }
 0x16c   :  { %v1098_v62 = vadd.f32 %v1097_v58, %v1096_v9  ;;  %vm363_vm13 = vcmp.eq.s32.totalorder %v2119_v52, %v2195_v12  ;;  %v753_v9 = vsel %vm3062_vm0, %v1371_v44, 0.0  ;;  %v3170_v45 = vmov 0 }
 0x16d   :  { %v395_v12 = vsel %vm363_vm13, %v1689_v29, 0.0  ;;  %v3171_v45 = vsel %vm2299_vm14, 4294967295, %v3170_v45  ;;  %v1279_v29 = vsel %vm2299_vm14, 1.0, %v1537_v19  ;;  %1380 = vpow2.f32 %v682_v6  ;;  %v3176_v6 = vld [vmem:[#allocation47_spill] sm:$0xff] }
 0x16e   :  { %v1373_v60 = vpop.eup %1372  ;;  %v684_v61 = vmul.f32 1.442695, %v629_v1  ;;  %v456_v8 = vsel %vm3062_vm0, %v395_v12, 0.0  ;;  %vm197_vm13 = vcmp.lt.s32.totalorder %v1913_v15, 64  ;;  %v686_v44 = vmul.f32 1.442695, %v630_v7 }
 0x16f   :  { %745 = vadd.xlane.f32.xlu0 %v744_v5  ;;  %445 = vadd.xlane.f32.xlu1 %v444_v13  ;;  %v2219_v16 = vpop.permute.xlu1 %299  ;;  %v1276_v13 = vsel %vm2260_vm7, 1.0, %v1537_v19  ;;  %v756_v25 = vsel %vm3062_vm0, %v1373_v60, 0.0  ;;  %vm2341_vm15 = vmand %vm165_vm11, %vm197_vm13  ;;  %vm166_vm2 = vcmp.ge.s32.totalorder %v1920_v18, 0  ;;  %v3177_v1 = vld [vmem:[#allocation8_spill] sm:$0xff]  ;;  %v688_v60 = vmul.f32 1.442695, %v631_v48 }
 0x170   :  { %v1099_v4 = vsel %vm3068_vm8, %v1276_v13, 0.0  ;;  %vm364_vm4 = vcmp.eq.s32.totalorder %v2119_v52, %v2219_v16  ;;  %v1105_v16 = vsel %vm3068_vm8, %v1279_v29, 0.0  ;;  %1382 = vpow2.f32 %v684_v61 }
 0x171   :  { %v1100_v2 = vadd.f32 %v1099_v4, %v1098_v62  ;;  %v396_v21 = vsel %vm364_vm4, %v1684_v28, 0.0  ;;  %v1280_v28 = vsel %vm2318_vm10, 1.0, %v1537_v19  ;;  %v3175_v49 = vsel %vm2341_vm15, 4294967295, %v3174_v49 }
 0x172   :  { %v1375_v55 = vpop.eup %1374  ;;  %v459_v13 = vsel %vm3062_vm0, %v396_v21, 0.0  ;;  %v1107_v4 = vsel %vm3068_vm8, %v1280_v28, 0.0  ;;  %vm198_vm4 = vcmp.lt.s32.totalorder %v1920_v18, 64  ;;  %1384 = vpow2.f32 %v686_v44  ;;  %v3185_v21 = vld [vmem:[#allocation53_spill] sm:$0xff] }
 0x173   :  { %748 = vadd.xlane.f32.xlu0 %v747_v50  ;;  %448 = vadd.xlane.f32.xlu1 %v447_v17  ;;  %v2235_v54 = vpop.permute.xlu1 %302  ;;  %v1103_v17 = vsel %vm3068_vm8, %v1278_v57, 0.0  ;;  %v1102_v58 = vadd.f32 %v1101_v24, %v1100_v2  ;;  %v759_v53 = vsel %vm3062_vm0, %v1375_v55, 0.0  ;;  %vm366_vm0 = vcmp.eq.s32.totalorder %v2119_v52, %v306_v10  ;;  %vm2363_vm13 = vmand %vm166_vm2, %vm198_vm4  ;;  %v3182_v55 = vld [vmem:[#allocation24_spill] sm:$0xff] }
 0x174   :  { %vm365_vm1 = vcmp.eq.s32.totalorder %v2119_v52, %v2235_v54  ;;  %v632_v2 = vsub.f32 %v3177_v1, %v3176_v6  ;;  %v3180_v61 = vmov 0  ;;  %1386 = vpow2.f32 %v688_v60 }
 0x175   :  { %v1104_v62 = vadd.f32 %v1103_v17, %v1102_v58  ;;  %v397_v54 = vsel %vm365_vm1, %v1703_v33, 0.0  ;;  %v1281_v33 = vsel %vm2341_vm15, 1.0, %v1537_v19  ;;  %vm3178_vm1 = vcmask 523264  }
 0x176   :  { %v1377_v57 = vpop.eup %1376  ;;  %vm3179_vm11 = vmmov %vm3178_vm1  ;;  %v398_v17 = vsel %vm366_vm0, %v1698_v32, 0.0  ;;  %v1109_v29 = vsel %vm3068_vm8, %v1281_v33, 0.0  ;;  %v3181_v61 = vsel %vm2363_vm13, 4294967295, %v3180_v61  ;;  %v1282_v32 = vsel %vm2363_vm13, 1.0, %v1537_v19 }
 0x177   :  { %751 = vadd.xlane.f32.xlu0 %v750_v46  ;;  %451 = vadd.xlane.f32.xlu1 %v450_v43  ;;  %v2267_v5 = vpop.permute.xlu1 %308  ;;  %v3172_v46 = vmov 0  ;;  %v1106_v24 = vadd.f32 %v1105_v16, %v1104_v62  ;;  %v762_v15 = vsel %vm3178_vm1, %v1377_v57, 0.0  ;;  %v1379_v12 = vpop.eup %1378  ;;  %vm167_vm1 = vcmp.ge.s32.totalorder %v3182_v55, 0  ;;  %v3186_v16 = vld [vmem:[#allocation14_spill] sm:$0xff]  ;;  %v3192_v57 = vld [vmem:[#allocation49_spill] sm:$0xff] }
 0x178   :  { %v3173_v46 = vsel %vm2318_vm10, 4294967295, %v3172_v46  ;;  %vm367_vm0 = vcmp.eq.s32.totalorder %v2119_v52, %v2267_v5  ;;  %v690_v7 = vmul.f32 1.442695, %v632_v2  ;;  %v59_v28 = vsub.f32 %v3186_v16, %v3185_v21 }
 0x179   :  { %vm3187_vm2 = vcmask 523264   ;;  %v399_v5 = vsel %vm367_vm0, %v1717_v37, 0.0 }
 0x17a   :  { %v1381_v62 = vpop.eup %1380  ;;  %v765_v48 = vsel %vm3187_vm2, %v1379_v12, 0.0  ;;  %vm3188_vm4 = vmmov %vm3187_vm2  ;;  %1388 = vpow2.f32 %v690_v7  ;;  %v60_v60 = vmul.f32 1.442695, %v59_v28  ;;  %v3200_v7 = vld [vmem:[#allocation11_spill] sm:$0xff] }
 0x17b   :  { %754 = vadd.xlane.f32.xlu0 %v753_v9  ;;  %454 = vadd.xlane.f32.xlu1 %v453_v20  ;;  %v2292_v50 = vpop.permute.xlu1 %311  ;;  %v462_v9 = vsel %vm3179_vm11, %v397_v54, 0.0  ;;  %v1108_v20 = vadd.f32 %v1107_v4, %v1106_v24  ;;  %vm199_vm11 = vcmp.lt.s32.totalorder %v3182_v55, 64  ;;  %v465_v10 = vsel %vm3188_vm4, %v398_v17, 0.0  ;;  %v3191_v24 = vld [vmem:[#allocation25_spill] sm:$0xff]  ;;  %v3193_v54 = vld [vmem:[#allocation10_spill] sm:$0xff] }
 0x17c   :  { %vm2386_vm13 = vmand %vm167_vm1, %vm199_vm11  ;;  %vm168_vm15 = vcmp.ge.s32.totalorder %v3191_v24, 0  ;;  %vm200_vm2 = vcmp.lt.s32.totalorder %v3191_v24, 64  ;;  %vm368_vm4 = vcmp.eq.s32.totalorder %v2119_v52, %v2292_v50  ;;  %v634_v4 = vsub.f32 %v3193_v54, %v3192_v57  ;;  %v3207_v54 = vld [vmem:[#allocation12_spill] sm:$0xff] }
 0x17d   :  { %v1110_v44 = vadd.f32 %v1109_v29, %v1108_v20  ;;  %v1283_v37 = vsel %vm2386_vm13, 1.0, %v1537_v19  ;;  %v1383_v2 = vpop.eup %1382  ;;  %vm3194_vm1 = vcmask 523264   ;;  %v400_v12 = vsel %vm368_vm4, %v1712_v36, 0.0  ;;  %vm2407_vm0 = vmand %vm168_vm15, %vm200_vm2  ;;  %v3198_v29 = vld [vmem:[#allocation26_spill] sm:$0xff]  ;;  %v3335_v57 = vld [vmem:[#allocation16_spill] sm:$0xff] }
 0x17e   :  { %vm3195_vm11 = vmmov %vm3194_vm1  ;;  %v1113_v50 = vsel %vm3068_vm8, %v1283_v37, 0.0  ;;  %v3196_v17 = vmov 0  ;;  %v1284_v36 = vsel %vm2407_vm0, 1.0, %v1537_v19  ;;  %v694_v55 = vmul.f32 1.442695, %v634_v4  ;;  %v3206_v37 = vld [vmem:[#allocation51_spill] sm:$0xff] }
 0x17f   :  { %757 = vadd.xlane.f32.xlu0 %v756_v25  ;;  %457 = vadd.xlane.f32.xlu1 %v456_v8  ;;  %v2331_v43 = vpop.permute.xlu1 %314  ;;  %v3183_v25 = vld [vmem:[#allocation48_spill] sm:$0xff]  ;;  %v3184_v8 = vld [vmem:[#allocation9_spill] sm:$0xff]  ;;  %v3197_v17 = vsel %vm2407_vm0, 4294967295, %v3196_v17  ;;  %vm3201_vm15 = vcmask 523264   ;;  %v1385_v28 = vpop.eup %1384  ;;  %v636_v4 = vsub.f32 %v3207_v54, %v3206_v37 }
 0x180   :  { %v633_v18 = vsub.f32 %v3184_v8, %v3183_v25  ;;  %vm3202_vm2 = vmmov %vm3201_vm15 }
 0x181   :  { %v1387_v24 = vpop.eup %1386 }
 0x182   :  { %v692_v33 = vmul.f32 1.442695, %v633_v18  ;;  %v771_v18 = vsel %vm3201_vm15, %v1383_v2, 0.0 }
 0x183   :  { %760 = vadd.xlane.f32.xlu0 %v759_v53  ;;  %460 = vadd.xlane.f32.xlu1 %v459_v13  ;;  %v2356_v58 = vpop.permute.xlu1 %317  ;;  %v1111_v53 = vsel %vm3068_vm8, %v1282_v32, 0.0  ;;  %v3189_v13 = vmov 0  ;;  %v3199_v32 = vld [vmem:[#allocation50_spill] sm:$0xff] }
 0x184   :  { %v3190_v13 = vsel %vm2386_vm13, 4294967295, %v3189_v13  ;;  %v1112_v20 = vadd.f32 %v1111_v53, %v1110_v44  ;;  %vm169_vm13 = vcmp.ge.s32.totalorder %v3198_v29, 0  ;;  %1390 = vpow2.f32 %v692_v33 }
 0x185   :  { %v635_v8 = vsub.f32 %v3200_v7, %v3199_v32  ;;  %1392 = vpow2.f32 %v60_v60  ;;  %v3203_v44 = vmov 0 }
 0x186   :  { %v1114_v16 = vadd.f32 %v1113_v50, %v1112_v20  ;;  %1394 = vpow2.f32 %v694_v55  ;;  %v3212_v50 = vld [vmem:[#allocation30_spill] sm:$0xff]  ;;  %v3214_v55 = vld [vmem:[#allocation13_spill] sm:$0xff] }
 0x187   :  { %763 = vadd.xlane.f32.xlu0 %v762_v15  ;;  %463 = vadd.xlane.f32.xlu1 %v462_v9  ;;  %v321_v1 = vpop.permute.xlu1 %320  ;;  %v768_v15 = vsel %vm3194_vm1, %v1381_v62, 0.0  ;;  %v468_v9 = vsel %vm3195_vm11, %v399_v5, 0.0  ;;  %vm201_vm1 = vcmp.lt.s32.totalorder %v3198_v29, 64  ;;  %vm369_vm11 = vcmp.eq.s32.totalorder %v2119_v52, %v2331_v43  ;;  %v3205_v5 = vld [vmem:[#allocation27_spill] sm:$0xff] }
 0x188   :  { %v471_v62 = vsel %vm3202_vm2, %v400_v12, 0.0  ;;  %v1115_v43 = vsel %vm3068_vm8, %v1284_v36, 0.0  ;;  %vm2430_vm4 = vmand %vm169_vm13, %vm201_vm1  ;;  %vm170_vm15 = vcmp.ge.s32.totalorder %v3205_v5, 0  ;;  %vm202_vm2 = vcmp.lt.s32.totalorder %v3205_v5, 64  ;;  %v3213_v36 = vld [vmem:[#allocation52_spill] sm:$0xff] }
 0x189   :  { %v3204_v44 = vsel %vm2430_vm4, 4294967295, %v3203_v44  ;;  %v696_v53 = vmul.f32 1.442695, %v635_v8  ;;  %vm3208_vm13 = vcmask 523264   ;;  %v1116_v60 = vadd.f32 %v1115_v43, %v1114_v16 }
 0x18a   :  { %v774_v33 = vsel %vm3208_vm13, %v1385_v28, 0.0  ;;  %vm3209_vm1 = vmmov %vm3208_vm13  ;;  %v3210_v12 = vmov 0  ;;  %vm171_vm13 = vcmp.ge.s32.totalorder %v3212_v50, 0  ;;  %vm371_vm0 = vcmp.eq.s32.totalorder %v2119_v52, %v321_v1  ;;  %v1479_v1 = vld [vmem:[%s2994_s3 + $0xb0] sm:$0xff] }
 0x18b   :  { %766 = vadd.xlane.f32.xlu0 %v765_v48  ;;  %466 = vadd.xlane.f32.xlu1 %v465_v10  ;;  %v401_v48 = vsel %vm369_vm11, %v1731_v41, 0.0  ;;  %v2423_v10 = vpop.permute.xlu1 %326  ;;  %vm370_vm11 = vcmp.eq.s32.totalorder %v2119_v52, %v2356_v58  ;;  %v1285_v41 = vsel %vm2430_vm4, 1.0, %v1537_v19  ;;  %v1478_v58 = vld [vmem:[%s2994_s3 + $0xa8] sm:$0xff]  ;;  %vm2455_vm4 = vmand %vm170_vm15, %vm202_vm2  ;;  %1396 = vpow2.f32 %v696_v53 }
 0x18c   :  { %v474_v2 = vsel %vm3209_vm1, %v401_v48, 0.0  ;;  %v1117_v20 = vsel %vm3068_vm8, %v1285_v41, 0.0  ;;  %v3211_v12 = vsel %vm2455_vm4, 4294967295, %v3210_v12  ;;  %vm203_vm1 = vcmp.lt.s32.totalorder %v3212_v50, 64  ;;  %v3219_v53 = vld [vmem:[#allocation32_spill] sm:$0xff] }
 0x18d   :  { %v1286_v29 = vsel %vm2455_vm4, 1.0, %v1537_v19  ;;  %v637_v7 = vsub.f32 %v3214_v55, %v3213_v36  ;;  %vm3215_vm15 = vcmask 523264   ;;  %v1118_v48 = vadd.f32 %v1117_v20, %v1116_v60  ;;  %v3225_v55 = vld [vmem:[#allocation34_spill] sm:$0xff] }
 0x18e   :  { %v777_v16 = vsel %vm3215_vm15, %v1387_v24, 0.0  ;;  %vm3216_vm2 = vmmov %vm3215_vm15  ;;  %v403_v43 = vsel %vm371_vm0, %v1479_v1, 0.0  ;;  %v1119_v5 = vsel %vm3068_vm8, %v1286_v29, 0.0  ;;  %v3217_v41 = vmov 0 }
 0x18f   :  { %769 = vadd.xlane.f32.xlu0 %v768_v15  ;;  %469 = vadd.xlane.f32.xlu1 %v468_v9  ;;  %v2445_v15 = vpop.permute.xlu0 %323  ;;  %v402_v9 = vsel %vm370_vm11, %v1478_v58, 0.0  ;;  %v2467_v8 = vpop.permute.xlu1 %335  ;;  %vm2479_vm11 = vmand %vm171_vm13, %vm203_vm1  ;;  %vm172_vm15 = vcmp.ge.s32.totalorder %v3219_v53, 0  ;;  %v700_v54 = vmul.f32 1.442695, %v637_v7  ;;  %vm3220_vm0 = vcmask 523264  }
 0x190   :  { %v477_v28 = vsel %vm3216_vm2, %v402_v9, 0.0  ;;  %v3218_v41 = vsel %vm2479_vm11, 4294967295, %v3217_v41  ;;  %vm204_vm2 = vcmp.lt.s32.totalorder %v3219_v53, 64  ;;  %v1287_v24 = vsel %vm2479_vm11, 1.0, %v1537_v19  ;;  %vm3221_vm8 = vmmov %vm3220_vm0 }
 0x191   :  { %v480_v60 = vsel %vm3221_vm8, %v403_v43, 0.0  ;;  %v1120_v58 = vadd.f32 %v1119_v5, %v1118_v48  ;;  %vm3222_vm13 = vcmask 7168   ;;  %vm2495_vm1 = vmand %vm172_vm15, %vm204_vm2  ;;  %v3223_v29 = vmov 0  ;;  %v1481_v5 = vld [vmem:[%s2994_s3 + $0xc0] sm:$0xff] }
 0x192   :  { %v1121_v50 = vsel %vm3222_vm13, %v1287_v24, 0.0  ;;  %v3224_v29 = vsel %vm2495_vm1, 4294967295, %v3223_v29  ;;  %vm173_vm11 = vcmp.ge.s32.totalorder %v3225_v55, 0  ;;  %vm373_vm8 = vcmp.eq.s32.totalorder %v2119_v52, %v2423_v10 }
 0x193   :  { %772 = vadd.xlane.f32.xlu0 %v771_v18  ;;  %472 = vadd.xlane.f32.xlu1 %v471_v62  ;;  %v1389_v18 = vpop.eup %1388  ;;  %v698_v62 = vmul.f32 1.442695, %v636_v4  ;;  %v330_v4 = vpop.permute.xlu0 %329  ;;  %v1288_v7 = vsel %vm2495_vm1, 1.0, %v1537_v19  ;;  %vm3227_vm15 = vcmask 523264   ;;  %vm3228_vm2 = vcmask 261120  }
 0x194   :  { %v2490_v20 = vpop.permute.xlu1 %338  ;;  %v1122_v43 = vadd.f32 %v1121_v50, %v1120_v58  ;;  %v405_v53 = vsel %vm373_vm8, %v1481_v5, 0.0  ;;  %v1123_v24 = vsel %vm3222_vm13, %v1288_v7, 0.0  ;;  %vm374_vm4 = vcmp.eq.s32.totalorder %v2119_v52, %v330_v4 }
 0x195   :  { %1398 = vpow2.f32 %v698_v62  ;;  %v3226_v62 = vld [vmem:[#allocation54_spill] sm:$0xff]  ;;  %vm3232_vm8 = vcmask 523264   ;;  %v3235_v5 = vmov 0  ;;  %v3313_v36 = vmov 0 }
 0x196   :  { %1400 = vpow2.f32 %v700_v54  ;;  %v3229_v54 = vmov 0  ;;  %v1124_v7 = vadd.f32 %v1123_v24, %v1122_v43 }
 0x197   :  { %775 = vadd.xlane.f32.xlu0 %v774_v33  ;;  %475 = vadd.xlane.f32.xlu1 %v474_v2  ;;  %v1391_v33 = vpop.eup %1390  ;;  %v780_v2 = vsel %vm3220_vm0, %v1389_v18, 0.0  ;;  %vm205_vm0 = vcmp.lt.s32.totalorder %v3225_v55, 64  ;;  %v2509_v18 = vld [vmem:[%s2996_s5] sm:$0xff]  ;;  %v2515_v10 = vpop.permute.xlu0 %332 }
 0x198   :  { %v1393_v9 = vpop.eup %1392  ;;  %v783_v48 = vsel %vm3227_vm15, %v1391_v33, 0.0  ;;  %vm2525_vm1 = vmand %vm173_vm11, %vm205_vm0  ;;  %v3231_v33 = vld [vmem:[#allocation28_spill] sm:$0xff] }
 0x199   :  { %v62_v1 = vsel %vm3228_vm2, %v1393_v9, 0.0  ;;  %v3230_v54 = vsel %vm2525_vm1, 4294967295, %v3229_v54  ;;  %vm174_vm15 = vcmp.ge.s32.totalorder %v3231_v33, 0  ;;  %vm206_vm2 = vcmp.lt.s32.totalorder %v3231_v33, 64  ;;  %vm3233_vm11 = vmmov %vm3232_vm8 }
 0x19a   :  { %v486_v55 = vsel %vm3233_vm11, %v405_v53, 0.0  ;;  %vm3234_vm0 = vmmov %vm3222_vm13 }
 0x19b   :  { %778 = vadd.xlane.f32.xlu0 %v777_v16  ;;  %478 = vadd.xlane.f32.xlu1 %v477_v28  ;;  %v1182_v16 = vsub.f32 %v2509_v18, %v3226_v62  ;;  %v1395_v28 = vpop.eup %1394  ;;  %vm2545_vm13 = vmand %vm174_vm15, %vm206_vm2  ;;  %v342_v43 = vpop.permute.xlu0 %341  ;;  %vm3240_vm15 = vcmask 7168  }
 0x19c   :  { %v1397_v58 = vpop.eup %1396  ;;  %v786_v50 = vsel %vm3232_vm8, %v1395_v28, 0.0  ;;  %v3236_v5 = vsel %vm2545_vm13, 4294967295, %v3235_v5  ;;  %v1290_v28 = vsel %vm2545_vm13, 1.0, %v1537_v19  ;;  %vm378_vm13 = vcmp.eq.s32.totalorder %v2119_v52, %v342_v43 }
 0x19d   :  { %v1183_v9 = vmul.f32 1.442695, %v1182_v16  ;;  %v3237_v16 = vld [vmem:[#allocation36_spill] sm:$0xff] }
 0x19e   :  { %vm175_vm8 = vcmp.ge.s32.totalorder %v3237_v16, 0  ;;  %vm207_vm11 = vcmp.lt.s32.totalorder %v3237_v16, 64 }
 0x19f   :  { %781 = vadd.xlane.f32.xlu0 %v780_v2  ;;  %481 = vadd.xlane.f32.xlu1 %v480_v60  ;;  %v1289_v2 = vsel %vm2525_vm1, 1.0, %v1537_v19  ;;  %v2535_v60 = vpop.permute.xlu1 %344  ;;  %vm376_vm1 = vcmp.eq.s32.totalorder %v2119_v52, %v2467_v8  ;;  %1402 = vpow2.f32 %v1183_v9  ;;  %v1127_v8 = vsel %vm3240_vm15, %v1290_v28, 0.0  ;;  %vm2566_vm2 = vmand %vm175_vm8, %vm207_vm11  ;;  %v3243_v9 = vld [vmem:[#allocation37_spill] sm:$0xff] }
 0x1a0   :  { %v1125_v4 = vsel %vm3234_vm0, %v1289_v2, 0.0  ;;  %vm3247_vm11 = vcmask 7168  }
 0x1a1   :  { %v1126_v33 = vadd.f32 %v1125_v4, %v1124_v7  ;;  %v1291_v7 = vsel %vm2566_vm2, 1.0, %v1537_v19 }
 0x1a2   :  { %v1399_v2 = vpop.eup %1398  ;;  %v1129_v43 = vsel %vm3247_vm11, %v1291_v7, 0.0 }
 0x1a3   :  { %784 = vadd.xlane.f32.xlu0 %v783_v48  ;;  %63 = vadd.xlane.f32.xlu1 %v62_v1  ;;  %v1482_v48 = vld [vmem:[%s2994_s3 + $0xc8] sm:$0xff]  ;;  %v1128_v28 = vadd.f32 %v1127_v8, %v1126_v33  ;;  %v1401_v16 = vpop.eup %1400 }
 0x1a4   :  { %v406_v1 = vsel %vm374_vm4, %v1482_v48, 0.0  ;;  %vm3238_vm4 = vcmask 523264   ;;  %v348_v48 = vpop.permute.xlu1 %347 }
 0x1a5   :  { %v789_v53 = vsel %vm3238_vm4, %v1397_v58, 0.0  ;;  %vm3239_vm0 = vmmov %vm3238_vm4  ;;  %v3241_v58 = vmov 0  ;;  %vm176_vm4 = vcmp.ge.s32.totalorder %v3243_v9, 0  ;;  %vm380_vm8 = vcmp.eq.s32.totalorder %v2119_v52, %v348_v48 }
 0x1a6   :  { %v489_v24 = vsel %vm3239_vm0, %v406_v1, 0.0  ;;  %v3242_v58 = vsel %vm2566_vm2, 4294967295, %v3241_v58  ;;  %vm208_vm0 = vcmp.lt.s32.totalorder %v3243_v9, 64  ;;  %v3248_v9 = vmov 0 }
 0x1a7   :  { %787 = vadd.xlane.f32.xlu0 %v786_v50  ;;  %487 = vadd.xlane.f32.xlu1 %v486_v55  ;;  %v1483_v50 = vld [vmem:[%s2994_s3 + $0xd8] sm:$0xff]  ;;  %vm2583_vm10 = vmand %vm176_vm4, %vm208_vm0  ;;  %v1130_v7 = vadd.f32 %v1129_v43, %v1128_v28  ;;  %v3254_v28 = vmov 0 }
 0x1a8   :  { %v408_v55 = vsel %vm376_vm1, %v1483_v50, 0.0  ;;  %vm3244_vm1 = vcmask 523264   ;;  %v3249_v9 = vsel %vm2583_vm10, 4294967295, %v3248_v9  ;;  %v1292_v33 = vsel %vm2583_vm10, 1.0, %v1537_v19  ;;  %vm3252_vm4 = vmmov %vm3247_vm11 }
 0x1a9   :  { %v792_v1 = vsel %vm3244_vm1, %v1399_v2, 0.0  ;;  %vm3245_vm15 = vmmov %vm3244_vm1  ;;  %v1173_v2 = vpop.permute.xlu1 %1172 }
 0x1aa   :  { %v495_v4 = vsel %vm3245_vm15, %v408_v55, 0.0  ;;  %vm372_vm15 = vcmp.eq.s32.totalorder %v2119_v52, %v2445_v15  ;;  %v1486_v15 = vld [vmem:[%s2994_s3 + $0xf8] sm:$0xff] }
 0x1ab   :  { %790 = vadd.xlane.f32.xlu0 %v789_v53  ;;  %490 = vadd.xlane.f32.xlu1 %v489_v24  ;;  %v3246_v53 = vld [vmem:[#allocation38_spill] sm:$0xff]  ;;  %v1484_v24 = vld [vmem:[%s2994_s3 + $0xe8] sm:$0xff]  ;;  %v412_v48 = vsel %vm380_vm8, %v1486_v15, 0.0  ;;  %vm3257_vm8 = vcmask 523264   ;;  %v3260_v15 = vmov 0 }
 0x1ac   :  { %v410_v50 = vsel %vm378_vm13, %v1484_v24, 0.0  ;;  %vm209_vm1 = vcmp.lt.s32.totalorder %v3246_v53, 64  ;;  %vm3250_vm13 = vcmask 523264   ;;  %v1131_v24 = vsel %vm3252_vm4, %v1292_v33, 0.0  ;;  %vm3258_vm4 = vmmov %vm3257_vm8 }
 0x1ad   :  { %v795_v55 = vsel %vm3250_vm13, %v1401_v16, 0.0  ;;  %vm3251_vm2 = vmmov %vm3250_vm13  ;;  %vm3253_vm0 = vcmp.ge.s32.totalorder %v3246_v53, 0  ;;  %v3256_v16 = vld [vmem:[#allocation39_spill] sm:$0xff]  ;;  %vm1174_vm13 = vcmp.eq.s32.totalorder %v2119_v52, %v1173_v2  ;;  %v507_v33 = vsel %vm3258_vm4, %v412_v48, 0.0  ;;  %v1403_v53 = vpop.eup %1402  ;;  %v3262_v2 = vld [vmem:[#allocation40_spill] sm:$0xff] }
 0x1ae   :  { %v501_v8 = vsel %vm3251_vm2, %v410_v50, 0.0  ;;  %vm2607_vm2 = vmand %vm3253_vm0, %vm209_vm1  ;;  %vm178_vm11 = vcmp.ge.s32.totalorder %v3256_v16, 0  ;;  %vm3259_vm1 = vcmask 7168   ;;  %vm179_vm10 = vcmp.ge.s32.totalorder %v3262_v2, 0 }
 0x1af   :  { %793 = vadd.xlane.f32.xlu0 %v792_v1  ;;  %496 = vadd.xlane.f32.xlu1 %v495_v4  ;;  %v1485_v1 = vld [vmem:[%s2994_s3 + $0xb8] sm:$0xff]  ;;  %v3255_v28 = vsel %vm2607_vm2, 4294967295, %v3254_v28  ;;  %v1293_v50 = vsel %vm2607_vm2, 1.0, %v1537_v19  ;;  %vm211_vm2 = vcmp.lt.s32.totalorder %v3262_v2, 64 }
 0x1b0   :  { %v404_v4 = vsel %vm372_vm15, %v1485_v1, 0.0  ;;  %vm210_vm15 = vcmp.lt.s32.totalorder %v3256_v16, 64  ;;  %v1133_v1 = vsel %vm3259_vm1, %v1293_v50, 0.0 }
 0x1b1   :  { %v483_v43 = vsel %vm3257_vm8, %v404_v4, 0.0  ;;  %vm2621_vm0 = vmand %vm178_vm11, %vm210_vm15  ;;  %vm375_vm8 = vcmp.eq.s32.totalorder %v2119_v52, %v2515_v10  ;;  %v3265_v10 = vmov 0 }
 0x1b2   :  { %v3261_v15 = vsel %vm2621_vm0, 4294967295, %v3260_v15  ;;  %vm3264_vm11 = vmmov %vm3259_vm1  ;;  %vm377_vm1 = vcmp.eq.s32.totalorder %v2119_v52, %v2490_v20  ;;  %v1489_v20 = vld [vmem:[%s2994_s3 + $0xe0] sm:$0xff] }
 0x1b3   :  { %796 = vadd.xlane.f32.xlu0 %v795_v55  ;;  %502 = vadd.xlane.f32.xlu1 %v501_v8  ;;  %v1132_v55 = vadd.f32 %v1131_v24, %v1130_v7  ;;  %v1175_v8 = vsel %vm1174_vm13, %v2509_v18, 0.0  ;;  %v1294_v7 = vsel %vm2621_vm0, 1.0, %v1537_v19  ;;  %vm3263_vm13 = vmmov %vm3258_vm4  ;;  %v1487_v24 = vld [vmem:[%s2994_s3 + $0xd0] sm:$0xff] }
 0x1b4   :  { %v1185_v18 = vsel %vm3263_vm13, %v1403_v53, 0.0  ;;  %v1176_v4 = vsel %vm3258_vm4, %v1175_v8, 0.0  ;;  %v407_v16 = vsel %vm375_vm8, %v1487_v24, 0.0  ;;  %v1135_v50 = vsel %vm3264_vm11, %v1294_v7, 0.0  ;;  %vm2638_vm15 = vmand %vm179_vm10, %vm211_vm2  ;;  %v1488_v8 = vld [vmem:[%s2995_s4 + $0xc8] sm:$0xff]  ;;  %v1490_v7 = vld [vmem:[%s2995_s4 + $0xb8] sm:$0xff] }
 0x1b5   :  { %v1134_v48 = vadd.f32 %v1133_v1, %v1132_v55  ;;  %v3266_v10 = vsel %vm2638_vm15, 4294967295, %v3265_v10  ;;  %vm3268_vm8 = vmmov %vm3258_vm4  ;;  %vm214_vm2 = vcmp.lt.s32.totalorder %v1488_v8, 64  ;;  %v409_v1 = vsel %vm377_vm1, %v1489_v20, 0.0 }
 0x1b6   :  { %v492_v55 = vsel %vm3268_vm8, %v407_v16, 0.0  ;;  %vm180_vm8 = vcmp.ge.s32.totalorder %v1490_v7, 0  ;;  %vm212_vm13 = vcmp.lt.s32.totalorder %v1490_v7, 64  ;;  %vm379_vm4 = vcmp.eq.s32.totalorder %v2119_v52, %v2535_v60  ;;  %v1491_v60 = vld [vmem:[%s2994_s3 + $0xf0] sm:$0xff] }
 0x1b7   :  { %484 = vadd.xlane.f32.xlu0 %v483_v43  ;;  %508 = vadd.xlane.f32.xlu1 %v507_v33  ;;  %v1295_v43 = vsel %vm2638_vm15, 1.0, %v1537_v19  ;;  %v3267_v33 = vld [vmem:[#allocation41_spill] sm:$0xff]  ;;  %v1136_v53 = vadd.f32 %v1135_v50, %v1134_v48  ;;  %vm3274_vm1 = vcmask 523264   ;;  %v3276_v50 = vmov 0 }
 0x1b8   :  { %v1137_v2 = vsel %vm3264_vm11, %v1295_v43, 0.0  ;;  %vm3269_vm10 = vcmp.lt.s32.totalorder %v3267_v33, 64  ;;  %vm3270_vm15 = vcmp.ge.s32.totalorder %v3267_v33, 0  ;;  %v498_v48 = vsel %vm3274_vm1, %v409_v1, 0.0 }
 0x1b9   :  { %vm2666_vm0 = vmand %vm3270_vm15, %vm3269_vm10  ;;  %v1138_v24 = vadd.f32 %v1137_v2, %v1136_v53  ;;  %vm3275_vm11 = vcmp.ge.s32.totalorder %v1488_v8, 0  ;;  %v411_v43 = vsel %vm379_vm4, %v1491_v60, 0.0  ;;  %v3279_v33 = vmov 0  ;;  %v3282_v8 = vld [vmem:[#allocation42_spill] sm:$0xff] }
 0x1ba   :  { %v1297_v16 = vsel %vm2666_vm0, 1.0, %v1537_v19  ;;  %vm2675_vm14 = vmand %vm3275_vm11, %vm214_vm2  ;;  %vm184_vm2 = vcmp.ge.s32.totalorder %v3282_v8, 0  ;;  %vm216_vm1 = vcmp.lt.s32.totalorder %v3282_v8, 64  ;;  %vm3283_vm4 = vcmask 7168  }
 0x1bb   :  { %1186 = vadd.xlane.f32.xlu0 %v1185_v18  ;;  %1177 = vadd.xlane.f32.xlu1 %v1176_v4  ;;  %v49_v18 = vpop.permute.xlu0 %48  ;;  %v3271_v4 = vmov 0  ;;  %v3277_v50 = vsel %vm2675_vm14, 4294967295, %v3276_v50  ;;  %vm2682_vm15 = vmand %vm180_vm8, %vm212_vm13  ;;  %v1141_v20 = vsel %vm3283_vm4, %v1297_v16, 0.0  ;;  %vm3285_vm8 = vcmask 523264  }
 0x1bc   :  { %v3272_v4 = vsel %vm2666_vm0, 4294967295, %v3271_v4  ;;  %3278 = vst [vmem:[#allocation24_spill] sm:$0xff] %v3277_v50  ;;  %v3280_v33 = vsel %vm2682_vm15, 4294967295, %v3279_v33  ;;  %vm50_vm10 = vcmp.eq.s32.totalorder %v2119_v52, %v49_v18  ;;  %v1296_v53 = vsel %vm2682_vm15, 1.0, %v1537_v19  ;;  %vm3284_vm13 = vmmov %vm3283_vm4  ;;  %v1492_v18 = vld [vmem:[%s2995_s4 + $0xd0] sm:$0xff] }
 0x1bd   :  { %3273 = vst [vmem:[#allocation8_spill] sm:$0xff] %v3272_v4  ;;  %3281 = vst [vmem:[#allocation9_spill] sm:$0xff] %v3280_v33  ;;  %v1139_v1 = vsel %vm3284_vm13, %v1296_v53, 0.0  ;;  %v504_v2 = vsel %vm3285_vm8, %v411_v43, 0.0  ;;  %v3287_v16 = vmov 0 }
 0x1be   :  { %v1140_v7 = vadd.f32 %v1139_v1, %v1138_v24  ;;  %vm3286_vm15 = vmmov %vm3283_vm4  ;;  %v1494_v24 = vld [vmem:[%s2995_s4 + $0xe8] sm:$0xff]  ;;  %v3290_v1 = vld [vmem:[#allocation43_spill] sm:$0xff] }
 0x1bf   :  { %493 = vadd.xlane.f32.xlu0 %v492_v55  ;;  %v1298_v55 = vsel %vm2675_vm14, 1.0, %v1537_v19  ;;  %vm215_vm14 = vcmp.lt.s32.totalorder %v1492_v18, 64  ;;  %vm2705_vm4 = vmand %vm184_vm2, %vm216_vm1  ;;  %vm186_vm13 = vcmp.ge.s32.totalorder %v1494_v24, 0  ;;  %vm218_vm8 = vcmp.lt.s32.totalorder %v1494_v24, 64  ;;  %v3296_v24 = vld [vmem:[#allocation45_spill] sm:$0xff] }
 0x1c0   :  { %v1143_v8 = vsel %vm3286_vm15, %v1298_v55, 0.0  ;;  %v3288_v16 = vsel %vm2705_vm4, 4294967295, %v3287_v16  ;;  %v1142_v43 = vadd.f32 %v1141_v20, %v1140_v7  ;;  %v1300_v53 = vsel %vm2705_vm4, 1.0, %v1537_v19 }
 0x1c1   :  { %3289 = vst [vmem:[#allocation14_spill] sm:$0xff] %v3288_v16  ;;  %vm3291_vm15 = vcmask 261120   ;;  %vm3292_vm2 = vcmp.ge.s32.totalorder %v1492_v18, 0  ;;  %vm3297_vm4 = vcmask 7168   ;;  %v3298_v18 = vmov 0 }
 0x1c2   :  { %vm2719_vm1 = vmand %vm3292_vm2, %vm215_vm14  ;;  %v1144_v20 = vadd.f32 %v1143_v8, %v1142_v43  ;;  %v1496_v43 = vld [vmem:[%s2995_s4 + $0xf8] sm:$0xff] }
 0x1c3   :  { %499 = vadd.xlane.f32.xlu0 %v498_v48  ;;  %v1493_v48 = vld [vmem:[%s2992_s1] sm:$0xff]  ;;  %v1299_v7 = vsel %vm2719_vm1, 1.0, %v1537_v19  ;;  %vm3301_vm14 = vmmov %vm3297_vm4  ;;  %vm220_vm2 = vcmp.lt.s32.totalorder %v1496_v43, 64 }
 0x1c4   :  { %v51_v60 = vsel %vm50_vm10, %v1493_v48, 0.0  ;;  %v1495_v48 = vld [vmem:[%s2993_s2] sm:$0xff]  ;;  %v1145_v8 = vsel %vm3301_vm14, %v1299_v7, 0.0  ;;  %v1497_v7 = vld [vmem:[%s2995_s4 + $0xf0] sm:$0xff] }
 0x1c5   :  { %v53_v55 = vsel %vm3291_vm15, %v51_v60, 0.0  ;;  %v1147_v60 = vsel %vm3297_vm4, %v1300_v53, 0.0  ;;  %vm2731_vm15 = vmand %vm186_vm13, %vm218_vm8  ;;  %v1146_v62 = vadd.f32 %v1145_v8, %v1144_v20  ;;  %vm3303_vm4 = vcmp.lt.s32.totalorder %v3290_v1, 64  ;;  %v3309_v8 = vld [vmem:[#allocation57_spill] sm:$0xff] }
 0x1c6   :  { %v3299_v18 = vsel %vm2731_vm15, 4294967295, %v3298_v18  ;;  %v1302_v52 = vsel %vm2731_vm15, 1.0, %v1537_v19  ;;  %vm3304_vm13 = vcmp.ge.s32.totalorder %v3290_v1, 0  ;;  %v3305_v53 = vmov 0 }
 0x1c7   :  { %505 = vadd.xlane.f32.xlu0 %v504_v2  ;;  %v3293_v2 = vmov 0  ;;  %3300 = vst [vmem:[#allocation10_spill] sm:$0xff] %v3299_v18  ;;  %vm2747_vm8 = vmand %vm3304_vm13, %vm3303_vm4  ;;  %vm187_vm14 = vcmp.ge.s32.totalorder %v1497_v7, 0  ;;  %vm219_vm10 = vcmp.lt.s32.totalorder %v1497_v7, 64  ;;  %vm43_vm11 = vcmp.lt.s32.totalorder %v1495_v48, 32  ;;  %v3334_v18 = vld [vmem:[#allocation15_spill] sm:$0xff] }
 0x1c8   :  { %v3294_v2 = vsel %vm2719_vm1, 4294967295, %v3293_v2  ;;  %v3306_v53 = vsel %vm2747_vm8, 4294967295, %v3305_v53  ;;  %v1301_v20 = vsel %vm2747_vm8, 1.0, %v1537_v19  ;;  %v1148_v1 = vadd.f32 %v1147_v60, %v1146_v62  ;;  %vm2768_vm0 = vmand %vm187_vm14, %vm219_vm10  ;;  %v1498_v62 = vld [vmem:[%s2997_s6] sm:$0xff] }
 0x1c9   :  { %3295 = vst [vmem:[#allocation25_spill] sm:$0xff] %v3294_v2  ;;  %3307 = vst [vmem:[#allocation26_spill] sm:$0xff] %v3306_v53  ;;  %vm3310_vm4 = vcmask 7168   ;;  %vm3312_vm15 = vcmp.ge.s32.totalorder %v3296_v24, 0  ;;  %vm1168_vm8 = vcmp.ge.s32.totalorder %v1498_v62, 0  ;;  %v1303_v24 = vsel %vm2768_vm0, 1.0, %v1537_v19 }
 0x1ca   :  { %v1149_v21 = vsel %vm3310_vm4, %v1301_v20, 0.0  ;;  %vm3311_vm13 = vmmov %vm3310_vm4  ;;  %vm1169_vm10 = vcmp.lt.s32.totalorder %v1498_v62, 64  ;;  %v3328_v62 = vld [vmem:[#allocation58_spill] sm:$0xff] }
 0x1cb   :  { %54 = vadd.xlane.f32.xlu0 %v53_v55  ;;  %v3302_v55 = vld [vmem:[#allocation56_spill] sm:$0xff]  ;;  %v1151_v37 = vsel %vm3311_vm13, %v1302_v52, 0.0  ;;  %vm2764_vm1 = vmand %vm3312_vm15, %vm220_vm2  ;;  %v1150_v7 = vadd.f32 %v1149_v21, %v1148_v1  ;;  %vm3319_vm15 = vcmp.ge.s32.totalorder %v1495_v48, 0  ;;  %v3320_v21 = vmov 0 }
 0x1cc   :  { %1404 = vlog2.f32 %v3302_v55  ;;  %v3308_v55 = vld [vmem:[#allocation55_spill] sm:$0xff]  ;;  %v3314_v36 = vsel %vm2764_vm1, 4294967295, %v3313_v36  ;;  %v1304_v52 = vsel %vm2764_vm1, 1.0, %v1537_v19  ;;  %vm2782_vm2 = vmand %vm3319_vm15, %vm43_vm11 }
 0x1cd   :  { %1406 = vlog2.f32 %v3308_v55  ;;  %3315 = vst [vmem:[#allocation11_spill] sm:$0xff] %v3314_v36  ;;  %v3316_v55 = vmov 0  ;;  %v3321_v21 = vsel %vm2782_vm2, 4294967295, %v3320_v21  ;;  %vm3323_vm14 = vmmov %vm3310_vm4  ;;  %v1272_v43 = vsel %vm2782_vm2, 1.0, %v1537_v19 }
 0x1ce   :  { %1408 = vlog2.f32 %v3309_v8  ;;  %v3317_v55 = vsel %vm2768_vm0, 4294967295, %v3316_v55  ;;  %3322 = vst [vmem:[#allocation12_spill] sm:$0xff] %v3321_v21  ;;  %v1153_v60 = vsel %vm3323_vm14, %v1303_v24, 0.0  ;;  %v1152_v20 = vadd.f32 %v1151_v37, %v1150_v7  ;;  %vm3324_vm13 = vmmov %vm3310_vm4  ;;  %v3329_v21 = vld [vmem:[#allocation59_spill] sm:$0xff]  ;;  %v731_v37 = vpop.xlane.xlu0 %730 }
 0x1cf   :  { %3318 = vst [vmem:[#allocation27_spill] sm:$0xff] %v3317_v55  ;;  %v83_v8 = vsel %vm3310_vm4, %v1272_v43, 0.0  ;;  %1410 = vlog2.f32 %v2107_v56  ;;  %v1155_v48 = vsel %vm3324_vm13, %v1304_v52, 0.0  ;;  %vm2794_vm11 = vmand %vm1168_vm8, %vm1169_vm10  ;;  %v3325_v36 = vmov 0  ;;  %v3332_v55 = vld [vmem:[#allocation62_spill] sm:$0xff] }
 0x1d0   :  { %84 = vadd.xlane.f32.xlu1 %v83_v8  ;;  %v1154_v1 = vadd.f32 %v1153_v60, %v1152_v20  ;;  %1412 = vlog2.f32 %v2109_v22  ;;  %v3326_v36 = vsel %vm2794_vm11, 4294967295, %v3325_v36  ;;  %v1305_v56 = vsel %vm2794_vm11, 1.0, %v1537_v19  ;;  %v3330_v60 = vld [vmem:[#allocation60_spill] sm:$0xff]  ;;  %vm3331_vm15 = vmmov %vm3310_vm4  ;;  %v3333_v19 = vld [vmem:[#allocation17_spill] sm:$0xff] }
 0x1d1   :  { %3327 = vst [vmem:[#allocation30_spill] sm:$0xff] %v3326_v36  ;;  %1414 = vlog2.f32 %v3328_v62  ;;  %v1205_v22 = vsel %vm3331_vm15, %v1305_v56, 0.0  ;;  %vm3337_vm8 = vmmov %vm3310_vm4  ;;  %vm3354_vm15 = vnez %v3181_v61 }
 0x1d2   :  { %v1156_v24 = vadd.f32 %v1155_v48, %v1154_v1  ;;  %1416 = vlog2.f32 %v3329_v21  ;;  %vm3341_vm10 = vmmov %vm3310_vm4 }
 0x1d3   :  { %1418 = vlog2.f32 %v3330_v60 }
 0x1d4   :  { %1157 = vadd.xlane.f32.xlu1 %v1156_v24  ;;  %1420 = vlog2.f32 %v3332_v55 }
 0x1d5   :  { %1422 = vlog2.f32 %v731_v37 }
 0x1d8   :  { %v416_v20 = vpop.xlane.xlu1 %415  ;;  %1206 = vadd.xlane.f32.xlu1 %v1205_v22 }
 0x1d9   :  { %v1405_v7 = vpop.eup %1404 }
 0x1da   :  { %v1407_v52 = vpop.eup %1406  ;;  %v801_v1 = vmul.f32 0.6931472, %v1405_v7 }
 0x1db   :  { %v1409_v43 = vpop.eup %1408  ;;  %v799_v21 = vmul.f32 0.6931472, %v1407_v52 }
 0x1dc   :  { %v419_v8 = vpop.xlane.xlu0 %418  ;;  %v803_v48 = vmul.f32 0.6931472, %v1409_v43  ;;  %v863_v36 = vadd.f32 %v801_v1, %v3333_v19  ;;  %v1411_v53 = vpop.eup %1410 }
 0x1dd   :  { %v1413_v60 = vpop.eup %1412  ;;  %v862_v56 = vadd.f32 %v799_v21, %v3334_v18  ;;  %v807_v37 = vmul.f32 0.6931472, %v1411_v53 }
 0x1de   :  { %v895_v2 = vsub.f32 %v863_v36, %v419_v8  ;;  %v864_v16 = vadd.f32 %v803_v48, %v3335_v57  ;;  %v1415_v6 = vpop.eup %1414  ;;  %v805_v1 = vmul.f32 0.6931472, %v1413_v60  ;;  %v3336_v36 = vld [vmem:[#allocation19_spill] sm:$0xff]  ;;  %v3339_v48 = vld [vmem:[#allocation18_spill] sm:$0xff] }
 0x1df   :  { %v1417_v7 = vpop.eup %1416  ;;  %v894_v22 = vsub.f32 %v862_v56, %v416_v20  ;;  %v809_v33 = vmul.f32 0.6931472, %v1415_v6  ;;  %v866_v8 = vadd.f32 %v807_v37, %v3336_v36  ;;  %v3338_v6 = vld [vmem:[#allocation20_spill] sm:$0xff] }
 0x1e0   :  { %v2806_v62 = vpop.xlane.xlu0 %733  ;;  %v428_v24 = vpop.xlane.xlu1 %427  ;;  %v927_v32 = vsel %vm2189_vm5, %v895_v2, 0.0  ;;  %v811_v19 = vmul.f32 0.6931472, %v1417_v7  ;;  %v865_v60 = vadd.f32 %v805_v1, %v3339_v48  ;;  %vm3340_vm5 = vmmov %vm3310_vm4  ;;  %v3342_v7 = vld [vmem:[#allocation21_spill] sm:$0xff] }
 0x1e1   :  { %v1419_v43 = vpop.eup %1418  ;;  %v926_v57 = vsel %vm2182_vm3, %v894_v22, 0.0  ;;  %v898_v2 = vsub.f32 %v866_v8, %v428_v24  ;;  %v867_v21 = vadd.f32 %v809_v33, %v3338_v6  ;;  %vm3344_vm3 = vmmov %vm3310_vm4  ;;  %vm3352_vm4 = vnez %v3175_v49 }
 0x1e2   :  { %v1421_v53 = vpop.eup %1420  ;;  %v958_v56 = vsel %vm3340_vm5, %v926_v57, 0.0  ;;  %v868_v22 = vadd.f32 %v811_v19, %v3342_v7  ;;  %vm3351_vm14 = vmmov %vm3344_vm3  ;;  %1424 = vlog2.f32 %v2806_v62 }
 0x1e3   :  { %v1423_v23 = vpop.eup %1422  ;;  %v815_v11 = vmul.f32 0.6931472, %v1421_v53  ;;  %v930_v33 = vsel %vm2245_vm6, %v898_v2, 0.0  ;;  %vm3347_vm6 = vnez %v3171_v45  ;;  %vm3353_vm13 = vmmov %vm3344_vm3 }
 0x1e4   :  { %v422_v50 = vpop.xlane.xlu0 %421  ;;  %v431_v55 = vpop.xlane.xlu1 %430  ;;  %vm3356_vm5 = vmmov %vm3344_vm3 }
 0x1e5   :  { %v896_v52 = vsub.f32 %v864_v16, %v422_v50  ;;  %v959_v50 = vsel %vm3337_vm8, %v927_v32, 0.0  ;;  %v813_v16 = vmul.f32 0.6931472, %v1419_v43  ;;  %v817_v32 = vmul.f32 0.6931472, %v1423_v23  ;;  %v3343_v43 = vld [vmem:[#allocation22_spill] sm:$0xff]  ;;  %vm3355_vm8 = vmmov %vm3344_vm3 }
 0x1e6   :  { %v960_v0 = vadd.f32 %v959_v50, %v958_v56  ;;  %v3345_v23 = vld [vmem:[#allocation23_spill] sm:$0xff] }
 0x1e7   :  { %v928_v20 = vsel %vm2214_vm9, %v896_v52, 0.0  ;;  %v899_v52 = vsub.f32 %v867_v21, %v431_v55  ;;  %v869_v30 = vadd.f32 %v813_v16, %v3343_v43  ;;  %v870_v6 = vadd.f32 %v815_v11, %v3345_v23  ;;  %vm3346_vm9 = vmmov %vm3344_vm3 }
 0x1e8   :  { %v2813_v25 = vpop.xlane.xlu0 %736  ;;  %v434_v18 = vpop.xlane.xlu1 %433  ;;  %v961_v27 = vsel %vm3341_vm10, %v928_v20, 0.0  ;;  %v965_v16 = vsel %vm3346_vm9, %v930_v33, 0.0  ;;  %vm3360_vm10 = vnez %v3190_v13  ;;  %vm3361_vm9 = vnez %v3197_v17 }
 0x1e9   :  { %v962_v24 = vadd.f32 %v961_v27, %v960_v0  ;;  %v900_v1 = vsub.f32 %v868_v22, %v434_v18  ;;  %v931_v55 = vsel %vm2273_vm12, %v899_v52, 0.0  ;;  %vm3350_vm12 = vnez %v3173_v46 }
 0x1eb   :  { %v932_v40 = vsel %vm3347_vm6, %v900_v1, 0.0  ;;  %vm3362_vm6 = vnez %v3204_v44 }
 0x1ec   :  { %v425_v37 = vpop.xlane.xlu0 %424  ;;  %v437_v36 = vpop.xlane.xlu1 %436  ;;  %v969_v11 = vsel %vm3351_vm14, %v932_v40, 0.0  ;;  %vm3365_vm14 = vnez %v3211_v12 }
 0x1ed   :  { %v897_v4 = vsub.f32 %v865_v60, %v425_v37  ;;  %v901_v53 = vsub.f32 %v869_v30, %v437_v36 }
 0x1ef   :  { %v929_v57 = vsel %vm2260_vm7, %v897_v4, 0.0  ;;  %v871_v4 = vadd.f32 %v817_v32, %v3348_v3  ;;  %vm3349_vm7 = vmmov %vm3344_vm3  ;;  %v933_v63 = vsel %vm3350_vm12, %v901_v53, 0.0  ;;  %v1425_v62 = vpop.eup %1424 }
 0x1f0   :  { %v963_v8 = vsel %vm3344_vm3, %v929_v57, 0.0  ;;  %v740_v19 = vpop.xlane.xlu0 %739  ;;  %v440_v20 = vpop.xlane.xlu1 %439  ;;  %v967_v21 = vsel %vm3349_vm7, %v931_v55, 0.0  ;;  %v971_v7 = vsel %vm3353_vm13, %v933_v63, 0.0  ;;  %vm3363_vm7 = vmmov %vm3344_vm3 }
 0x1f1   :  { %v964_v50 = vadd.f32 %v963_v8, %v962_v24  ;;  %v902_v2 = vsub.f32 %v870_v6, %v440_v20  ;;  %1426 = vlog2.f32 %v740_v19  ;;  %v819_v19 = vmul.f32 0.6931472, %v1425_v62  ;;  %vm3364_vm12 = vmmov %vm3344_vm3 }
 0x1f2   :  { %1428 = vlog2.f32 %v2813_v25  ;;  %vm3367_vm13 = vmmov %vm3344_vm3 }
 0x1f3   :  { %v966_v18 = vadd.f32 %v965_v16, %v964_v50  ;;  %v934_v45 = vsel %vm3352_vm4, %v902_v2, 0.0  ;;  %vm3366_vm4 = vnez %v3218_v41 }
 0x1f4   :  { %v743_v48 = vpop.xlane.xlu0 %742  ;;  %v443_v60 = vpop.xlane.xlu1 %442  ;;  %v973_v52 = vsel %vm3355_vm8, %v934_v45, 0.0  ;;  %vm3369_vm8 = vnez %v3224_v29 }
 0x1f5   :  { %v968_v56 = vadd.f32 %v967_v21, %v966_v18  ;;  %v903_v30 = vsub.f32 %v871_v4, %v443_v60  ;;  %1430 = vlog2.f32 %v743_v48  ;;  %v3357_v60 = vld [vmem:[#allocation33_spill] sm:$0xff] }
 0x1f7   :  { %v970_v27 = vadd.f32 %v969_v11, %v968_v56  ;;  %v935_v0 = vsel %vm3354_vm15, %v903_v30, 0.0  ;;  %v872_v56 = vadd.f32 %v819_v19, %v3357_v60  ;;  %vm3368_vm15 = vmmov %vm3344_vm3 }
 0x1f8   :  { %v746_v22 = vpop.xlane.xlu0 %745  ;;  %v446_v37 = vpop.xlane.xlu1 %445  ;;  %v975_v46 = vsel %vm3356_vm5, %v935_v0, 0.0  ;;  %vm3370_vm5 = vnez %v3230_v54 }
 0x1f9   :  { %v972_v36 = vadd.f32 %v971_v7, %v970_v27  ;;  %1432 = vlog2.f32 %v746_v22  ;;  %v904_v7 = vsub.f32 %v872_v56, %v446_v37 }
 0x1fb   :  { %v974_v32 = vadd.f32 %v973_v52, %v972_v36  ;;  %v3358_v36 = vld [vmem:[#allocation31_spill] sm:$0xff] }
 0x1fc   :  { %v749_v43 = vpop.xlane.xlu0 %748  ;;  %v449_v33 = vpop.xlane.xlu1 %448 }
 0x1fd   :  { %v2850_v24 = vadd.f32 %v975_v46, %v974_v32  ;;  %1434 = vlog2.f32 %v749_v43 }
 0x1fe   :  { %v1427_v40 = vpop.eup %1426 }
 0x1ff   :  { %v1429_v18 = vpop.eup %1428  ;;  %v823_v4 = vmul.f32 0.6931472, %v1427_v40 }
 0x200   :  { %v752_v1 = vpop.xlane.xlu0 %751  ;;  %v452_v49 = vpop.xlane.xlu1 %451  ;;  %v821_v48 = vmul.f32 0.6931472, %v1429_v18 }
 0x201   :  { %1436 = vlog2.f32 %v752_v1  ;;  %v874_v22 = vadd.f32 %v823_v4, %v1996_v26 }
 0x202   :  { %v1431_v3 = vpop.eup %1430  ;;  %v873_v0 = vadd.f32 %v821_v48, %v3358_v36 }
 0x203   :  { %v825_v11 = vmul.f32 0.6931472, %v1431_v3 }
 0x204   :  { %v755_v57 = vpop.xlane.xlu0 %754  ;;  %v2852_v8 = vpop.xlane.xlu1 %454  ;;  %v905_v1 = vsub.f32 %v873_v0, %v449_v33 }
 0x205   :  { %1438 = vlog2.f32 %v755_v57  ;;  %v3359_v57 = vld [vmem:[#allocation35_spill] sm:$0xff] }
 0x206   :  { %v1433_v21 = vpop.eup %1432  ;;  %v937_v19 = vsel %vm3361_vm9, %v905_v1, 0.0  ;;  %vm3372_vm9 = vnez %v3236_v5 }
 0x207   :  { %v827_v45 = vmul.f32 0.6931472, %v1433_v21  ;;  %v979_v17 = vsel %vm3363_vm7, %v937_v19, 0.0  ;;  %vm3374_vm7 = vmmov %vm3344_vm3 }
 0x208   :  { %v758_v20 = vpop.xlane.xlu0 %757  ;;  %v2855_v55 = vpop.xlane.xlu1 %457 }
 0x209   :  { %1440 = vlog2.f32 %v758_v20  ;;  %v875_v20 = vadd.f32 %v825_v11, %v3359_v57  ;;  %v876_v37 = vadd.f32 %v827_v45, %v2010_v14 }
 0x20a   :  { %v1435_v27 = vpop.eup %1434 }
 0x20b   :  { %v829_v43 = vmul.f32 0.6931472, %v1435_v27  ;;  %v908_v14 = vsub.f32 %v876_v37, %v2855_v55 }
 0x20c   :  { %v761_v61 = vpop.xlane.xlu0 %760  ;;  %v2858_v50 = vpop.xlane.xlu1 %460 }
 0x20d   :  { %1442 = vlog2.f32 %v761_v61  ;;  %v936_v61 = vsel %vm3360_vm10, %v904_v7, 0.0  ;;  %v877_v33 = vadd.f32 %v829_v43, %v1999_v38  ;;  %v940_v55 = vsel %vm3366_vm4, %v908_v14, 0.0  ;;  %vm3371_vm10 = vmmov %vm3344_vm3 }
 0x20e   :  { %v1437_v52 = vpop.eup %1436  ;;  %v977_v18 = vsel %vm3344_vm3, %v936_v61, 0.0  ;;  %v985_v41 = vsel %vm3368_vm15, %v940_v55, 0.0  ;;  %vm3377_vm4 = vnez %v3255_v28  ;;  %vm3379_vm15 = vnez %v3261_v15 }
 0x20f   :  { %v831_v26 = vmul.f32 0.6931472, %v1437_v52  ;;  %v978_v21 = vadd.f32 %v977_v18, %v2850_v24  ;;  %v909_v11 = vsub.f32 %v877_v33, %v2858_v50 }
 0x210   :  { %v764_v53 = vpop.xlane.xlu0 %763  ;;  %v2860_v23 = vpop.xlane.xlu1 %463 }
 0x211   :  { %1444 = vlog2.f32 %v764_v53  ;;  %v906_v53 = vsub.f32 %v874_v22, %v452_v49  ;;  %v878_v48 = vadd.f32 %v831_v26, %v2025_v47  ;;  %v980_v45 = vadd.f32 %v979_v17, %v978_v21 }
 0x212   :  { %v1439_v62 = vpop.eup %1438 }
 0x213   :  { %v938_v13 = vsel %vm3362_vm6, %v906_v53, 0.0  ;;  %v833_v49 = vmul.f32 0.6931472, %v1439_v62  ;;  %v910_v7 = vsub.f32 %v878_v48, %v2860_v23  ;;  %vm3373_vm6 = vnez %v3242_v58 }
 0x214   :  { %v767_v6 = vpop.xlane.xlu0 %766  ;;  %v2862_v16 = vpop.xlane.xlu1 %466  ;;  %v981_v38 = vsel %vm3364_vm12, %v938_v13, 0.0  ;;  %vm3375_vm12 = vnez %v3249_v9 }
 0x215   :  { %1446 = vlog2.f32 %v767_v6  ;;  %v879_v24 = vadd.f32 %v833_v49, %v2017_v51  ;;  %v941_v51 = vsel %vm3369_vm8, %v909_v11, 0.0  ;;  %v942_v57 = vsel %vm3370_vm5, %v910_v7, 0.0  ;;  %vm3380_vm8 = vmmov %vm3344_vm3 }
 0x216   :  { %v1441_v40 = vpop.eup %1440  ;;  %v989_v26 = vsel %vm3344_vm3, %v942_v57, 0.0  ;;  %vm3381_vm5 = vnez %v3266_v10 }
 0x217   :  { %v835_v60 = vmul.f32 0.6931472, %v1441_v40  ;;  %v911_v43 = vsub.f32 %v879_v24, %v2862_v16 }
 0x218   :  { %v770_v25 = vpop.xlane.xlu0 %769  ;;  %v2864_v2 = vpop.xlane.xlu1 %469 }
 0x219   :  { %1448 = vlog2.f32 %v770_v25  ;;  %v907_v25 = vsub.f32 %v875_v20, %v2852_v8  ;;  %v880_v12 = vadd.f32 %v835_v60, %v2038_v59  ;;  %v987_v59 = vsel %vm3371_vm10, %v941_v51, 0.0  ;;  %vm3382_vm10 = vmmov %vm3344_vm3 }
 0x21a   :  { %v1443_v4 = vpop.eup %1442 }
 0x21b   :  { %v939_v44 = vsel %vm3365_vm14, %v907_v25, 0.0  ;;  %v837_v27 = vmul.f32 0.6931472, %v1443_v4  ;;  %v912_v61 = vsub.f32 %v880_v12, %v2864_v2  ;;  %vm3376_vm14 = vmmov %vm3344_vm3 }
 0x21c   :  { %v773_v63 = vpop.xlane.xlu0 %772  ;;  %v2867_v30 = vpop.xlane.xlu1 %472  ;;  %v983_v36 = vsel %vm3367_vm13, %v939_v44, 0.0  ;;  %vm3378_vm13 = vmmov %vm3344_vm3 }
 0x21d   :  { %v881_v23 = vadd.f32 %v837_v27, %v2030_v35  ;;  %v943_v35 = vsel %vm3372_vm9, %v911_v43, 0.0  ;;  %v944_v2 = vsel %vm3373_vm6, %v912_v61, 0.0  ;;  %v3388_v61 = vld [vmem:[#allocation9_spill] sm:$0xff] }
 0x21e   :  { %v1445_v56 = vpop.eup %1444  ;;  %v991_v33 = vsel %vm3374_vm7, %v943_v35, 0.0  ;;  %v993_v58 = vsel %vm3376_vm14, %v944_v2, 0.0  ;;  %vm3389_vm6 = vnez %v3388_v61  ;;  %vm3390_vm7 = vmmov %vm3344_vm3 }
 0x21f   :  { %v839_v0 = vmul.f32 0.6931472, %v1445_v56  ;;  %v913_v16 = vsub.f32 %v881_v23, %v2867_v30 }
 0x220   :  { %v776_v32 = vpop.xlane.xlu0 %775  ;;  %v2871_v46 = vpop.xlane.xlu1 %475 }
 0x221   :  { %1450 = vlog2.f32 %v776_v32  ;;  %v982_v32 = vadd.f32 %v981_v38, %v980_v45  ;;  %v882_v53 = vadd.f32 %v839_v0, %v2053_v42  ;;  %v945_v5 = vsel %vm3375_vm12, %v913_v16, 0.0  ;;  %v3383_v45 = vld [vmem:[#allocation46_spill] sm:$0xff]  ;;  %vm3391_vm12 = vmmov %vm3344_vm3 }
 0x222   :  { %1452 = vlog2.f32 %v773_v63  ;;  %v1447_v47 = vpop.eup %1446  ;;  %v995_v48 = vsel %vm3378_vm13, %v945_v5, 0.0 }
 0x223   :  { %v841_v63 = vmul.f32 0.6931472, %v1447_v47  ;;  %v984_v1 = vadd.f32 %v983_v36, %v982_v32  ;;  %v914_v42 = vsub.f32 %v882_v53, %v2871_v46 }
 0x224   :  { %v779_v6 = vpop.xlane.xlu0 %778  ;;  %v2882_v3 = vpop.xlane.xlu1 %478 }
 0x225   :  { %1454 = vlog2.f32 %v779_v6  ;;  %v986_v29 = vadd.f32 %v985_v41, %v984_v1  ;;  %v883_v54 = vadd.f32 %v841_v63, %v2045_v34  ;;  %v3385_v41 = vld [vmem:[#allocation8_spill] sm:$0xff] }
 0x226   :  { %v1449_v50 = vpop.eup %1448  ;;  %vm3386_vm9 = vnez %v3385_v41  ;;  %v3387_v63 = vld [vmem:[#allocation48_spill] sm:$0xff] }
 0x227   :  { %v843_v20 = vmul.f32 0.6931472, %v1449_v50  ;;  %v988_v40 = vadd.f32 %v987_v59, %v986_v29  ;;  %v915_v34 = vsub.f32 %v883_v54, %v2882_v3  ;;  %v3392_v54 = vld [vmem:[#allocation50_spill] sm:$0xff] }
 0x228   :  { %v782_v8 = vpop.xlane.xlu0 %781  ;;  %v482_v22 = vpop.xlane.xlu1 %481 }
 0x229   :  { %v884_v18 = vadd.f32 %v843_v20, %v2056_v31  ;;  %v990_v25 = vadd.f32 %v989_v26, %v988_v40  ;;  %v946_v31 = vsel %vm3377_vm4, %v914_v42, 0.0  ;;  %v947_v9 = vsel %vm3379_vm15, %v915_v34, 0.0  ;;  %v3393_v40 = vld [vmem:[#allocation24_spill] sm:$0xff]  ;;  %vm3396_vm4 = vmmov %vm3344_vm3 }
 0x22a   :  { %v997_v56 = vsel %vm3380_vm8, %v946_v31, 0.0  ;;  %v999_v55 = vsel %vm3382_vm10, %v947_v9, 0.0  ;;  %vm3394_vm14 = vnez %v3393_v40  ;;  %vm3402_vm8 = vmmov %vm3344_vm3 }
 0x22b   :  { %v992_v46 = vadd.f32 %v991_v33, %v990_v25  ;;  %v916_v4 = vsub.f32 %v884_v18, %v482_v22  ;;  %v3384_v22 = vld [vmem:[#allocation44_spill] sm:$0xff]  ;;  %v3395_v18 = vld [vmem:[#allocation47_spill] sm:$0xff] }
 0x22c   :  { %v785_v52 = vpop.xlane.xlu0 %784  ;;  %v64_v62 = vpop.xlane.xlu1 %63 }
 0x22d   :  { %1456 = vlog2.f32 %v785_v52  ;;  %v994_v17 = vadd.f32 %v993_v58, %v992_v46  ;;  %v948_v28 = vsel %vm3381_vm5, %v916_v4, 0.0  ;;  %v3397_v58 = vld [vmem:[#allocation14_spill] sm:$0xff]  ;;  %v3399_v46 = vld [vmem:[#allocation49_spill] sm:$0xff]  ;;  %vm3403_vm5 = vmmov %vm3344_vm3 }
 0x22e   :  { %v1451_v6 = vpop.eup %1450  ;;  %1458 = vlog2.f32 %v782_v8  ;;  %vm3398_vm13 = vnez %v3397_v58 }
 0x22f   :  { %v847_v30 = vmul.f32 0.6931472, %v1451_v6  ;;  %v1453_v13 = vpop.eup %1452  ;;  %v996_v44 = vadd.f32 %v995_v48, %v994_v17  ;;  %v3400_v17 = vld [vmem:[#allocation25_spill] sm:$0xff] }
 0x230   :  { %v788_v37 = vpop.xlane.xlu0 %787  ;;  %v488_v49 = vpop.xlane.xlu1 %487  ;;  %v845_v8 = vmul.f32 0.6931472, %v1453_v13  ;;  %vm3401_vm15 = vnez %v3400_v17 }
 0x231   :  { %v886_v3 = vadd.f32 %v847_v30, %v2069_v39  ;;  %v998_v24 = vadd.f32 %v997_v56, %v996_v44  ;;  %v1001_v39 = vsel %vm3344_vm3, %v948_v28, 0.0 }
 0x232   :  { %v1455_v14 = vpop.eup %1454  ;;  %v885_v36 = vadd.f32 %v845_v8, %v3384_v22 }
 0x233   :  { %v849_v38 = vmul.f32 0.6931472, %v1455_v14  ;;  %v918_v47 = vsub.f32 %v886_v3, %v488_v49  ;;  %v1000_v12 = vadd.f32 %v999_v55, %v998_v24 }
 0x234   :  { %v791_v19 = vpop.xlane.xlu0 %790  ;;  %v491_v27 = vpop.xlane.xlu1 %490 }
 0x235   :  { %1460 = vlog2.f32 %v791_v19  ;;  %v887_v7 = vadd.f32 %v849_v38, %v3383_v45  ;;  %v1002_v32 = vadd.f32 %v1001_v39, %v1000_v12  ;;  %v950_v51 = vsel %vm3386_vm9, %v918_v47, 0.0  ;;  %v3409_v45 = vld [vmem:[#allocation51_spill] sm:$0xff]  ;;  %vm3410_vm9 = vmmov %vm3396_vm4 }
 0x236   :  { %1462 = vlog2.f32 %v788_v37  ;;  %v1005_v35 = vsel %vm3391_vm12, %v950_v51, 0.0  ;;  %vm3418_vm12 = vmmov %vm3396_vm4 }
 0x237   :  { %v919_v59 = vsub.f32 %v887_v7, %v491_v27  ;;  %v3406_v27 = vld [vmem:[#allocation52_spill] sm:$0xff] }
 0x238   :  { %v794_v21 = vpop.xlane.xlu0 %793  ;;  %v497_v20 = vpop.xlane.xlu1 %496 }
 0x239   :  { %1464 = vlog2.f32 %v794_v21  ;;  %v951_v2 = vsel %vm3394_vm14, %v919_v59, 0.0 }
 0x23a   :  { %v1457_v60 = vpop.eup %1456  ;;  %v1007_v13 = vsel %vm3396_vm4, %v951_v2, 0.0 }
 0x23b   :  { %v853_v15 = vmul.f32 0.6931472, %v1457_v60  ;;  %v1459_v0 = vpop.eup %1458 }
 0x23c   :  { %v797_v11 = vpop.xlane.xlu0 %796  ;;  %v851_v1 = vmul.f32 0.6931472, %v1459_v0  ;;  %v503_v5 = vpop.xlane.xlu1 %502 }
 0x23d   :  { %1466 = vlog2.f32 %v797_v11  ;;  %v889_v43 = vadd.f32 %v853_v15, %v3387_v63  ;;  %v3404_v11 = vld [vmem:[#allocation10_spill] sm:$0xff] }
 0x23e   :  { %1468 = vlog2.f32 %v64_v62  ;;  %v888_v19 = vadd.f32 %v851_v1, %v3395_v18  ;;  %vm3405_vm10 = vnez %v3404_v11  ;;  %v3407_v15 = vld [vmem:[#allocation26_spill] sm:$0xff] }
 0x23f   :  { %v921_v16 = vsub.f32 %v889_v43, %v497_v20  ;;  %vm3408_vm3 = vnez %v3407_v15  ;;  %v3415_v20 = vld [vmem:[#allocation54_spill] sm:$0xff] }
 0x240   :  { %v485_v52 = vpop.xlane.xlu0 %484 }
 0x241   :  { %v917_v10 = vsub.f32 %v885_v36, %v485_v52  ;;  %v953_v49 = vsel %vm3398_vm13, %v921_v16, 0.0 }
 0x242   :  { %v1461_v50 = vpop.eup %1460  ;;  %v1011_v28 = vsel %vm3403_vm5, %v953_v49, 0.0 }
 0x243   :  { %v1463_v23 = vpop.eup %1462  ;;  %v857_v57 = vmul.f32 0.6931472, %v1461_v50  ;;  %v949_v53 = vsel %vm3389_vm6, %v917_v10, 0.0  ;;  %vm3411_vm6 = vmmov %vm3396_vm4  ;;  %v509_v50 = vpop.xlane.xlu1 %508 }
 0x244   :  { %v1003_v37 = vsel %vm3390_vm7, %v949_v53, 0.0  ;;  %v1187_v29 = vpop.xlane.xlu0 %1186  ;;  %v855_v26 = vmul.f32 0.6931472, %v1463_v23  ;;  %vm3414_vm7 = vmmov %vm3396_vm4 }
 0x245   :  { %v1004_v62 = vadd.f32 %v1003_v37, %v1002_v32  ;;  %1470 = vlog2.f32 %v1187_v29  ;;  %v891_v6 = vadd.f32 %v857_v57, %v3392_v54  ;;  %v3412_v32 = vld [vmem:[#allocation53_spill] sm:$0xff] }
 0x246   :  { %v1465_v25 = vpop.eup %1464  ;;  %v890_v31 = vadd.f32 %v855_v26, %v3399_v46 }
 0x247   :  { %v1006_v42 = vadd.f32 %v1005_v35, %v1004_v62  ;;  %v923_v14 = vsub.f32 %v891_v6, %v503_v5  ;;  %v859_v21 = vmul.f32 0.6931472, %v1465_v25  ;;  %v1178_v16 = vpop.xlane.xlu1 %1177 }
 0x248   :  { %v494_v33 = vpop.xlane.xlu0 %493 }
 0x249   :  { %v920_v30 = vsub.f32 %v888_v19, %v494_v33  ;;  %v1008_v3 = vadd.f32 %v1007_v13, %v1006_v42  ;;  %v955_v55 = vsel %vm3405_vm10, %v923_v14, 0.0  ;;  %v892_v7 = vadd.f32 %v859_v21, %v3409_v45 }
 0x24a   :  { %v1467_v34 = vpop.eup %1466  ;;  %v1015_v10 = vsel %vm3411_vm6, %v955_v55, 0.0 }
 0x24b   :  { %v1469_v4 = vpop.eup %1468  ;;  %v861_v48 = vmul.f32 0.6931472, %v1467_v34  ;;  %v952_v9 = vsel %vm3401_vm15, %v920_v30, 0.0 }
 0x24c   :  { %v1009_v60 = vsel %vm3402_vm8, %v952_v9, 0.0  ;;  %v500_v8 = vpop.xlane.xlu0 %499  ;;  %v66_v44 = vmul.f32 0.6931472, %v1469_v4 }
 0x24d   :  { %v1010_v56 = vadd.f32 %v1009_v60, %v1008_v3  ;;  %v922_v38 = vsub.f32 %v890_v31, %v500_v8  ;;  %v893_v24 = vadd.f32 %v861_v48, %v3406_v27 }
 0x24e   :  { %v67_v41 = vadd.f32 %v66_v44, %v3412_v32 }
 0x24f   :  { %v954_v47 = vsel %vm3408_vm3, %v922_v38, 0.0  ;;  %v1012_v39 = vadd.f32 %v1011_v28, %v1010_v56  ;;  %v925_v51 = vsub.f32 %v893_v24, %v509_v50 }
 0x250   :  { %v1013_v22 = vsel %vm3410_vm9, %v954_v47, 0.0  ;;  %v506_v36 = vpop.xlane.xlu0 %505 }
 0x251   :  { %v1014_v0 = vadd.f32 %v1013_v22, %v1012_v39  ;;  %v924_v12 = vsub.f32 %v892_v7, %v506_v36  ;;  %v957_v29 = vsel %vm2764_vm1, %v925_v51, 0.0 }
 0x252   :  { %v1471_v52 = vpop.eup %1470 }
 0x253   :  { %v1189_v63 = vmul.f32 0.6931472, %v1471_v52  ;;  %v956_v23 = vsel %vm2768_vm0, %v924_v12, 0.0  ;;  %v1016_v1 = vadd.f32 %v1015_v10, %v1014_v0  ;;  %vm3419_vm0 = vmmov %vm3396_vm4 }
 0x254   :  { %v1017_v57 = vsel %vm3414_vm7, %v956_v23, 0.0  ;;  %v55_v59 = vpop.xlane.xlu0 %54  ;;  %v1019_v40 = vsel %vm3419_vm0, %v957_v29, 0.0  ;;  %vm3421_vm14 = vmmov %vm3419_vm0 }
 0x255   :  { %v1190_v61 = vadd.f32 %v1189_v63, %v3415_v20  ;;  %v68_v53 = vsub.f32 %v67_v41, %v55_v59  ;;  %v1018_v62 = vadd.f32 %v1017_v57, %v1016_v1  ;;  %v3422_v20 = vld [vmem:[#allocation61_spill] sm:$0xff] }
 0x256   :  { %vm1247_vm1 = vcmp.eq.s32.totalorder %v3422_v20, 3  ;;  %vm1244_vm4 = vcmp.eq.s32.totalorder %v3422_v20, 0 }
 0x257   :  { %v69_v35 = vsel %vm2782_vm2, %v68_v53, 0.0  ;;  %v1191_v6 = vsub.f32 %v1190_v61, %v1178_v16  ;;  %v1020_v2 = vadd.f32 %v1019_v40, %v1018_v62  ;;  %vm1246_vm2 = vcmp.eq.s32.totalorder %v3422_v20, 2 }
 0x258   :  { %v71_v54 = vsel %vm3418_vm12, %v69_v35, 0.0 }
 0x259   :  { %72 = vadd.xlane.f32.xlu0 %v71_v54  ;;  %v1192_v18 = vsel %vm2794_vm11, %v1191_v6, 0.0  ;;  %v85_v25 = vpop.xlane.xlu1 %84  ;;  %vm1245_vm11 = vcmp.eq.s32.totalorder %v3422_v20, 1 }
 0x25a   :  { %v1193_v19 = vsel %vm3421_vm14, %v1192_v18, 0.0  ;;  %v86_v5 = vrot.slane %v85_v25, 4 }
 0x25c   :  { %v87_v30 = vadd.f32 %v86_v5, %v85_v25 }
 0x25d   :  { %1021 = vadd.xlane.f32.xlu0 %v1020_v2  ;;  %v1158_v33 = vpop.xlane.xlu1 %1157 }
 0x25e   :  { %v1159_v34 = vrot.slane %v1158_v33, 4  ;;  %v88_v58 = vrot.slane %v87_v30, 2 }
 0x260   :  { %v1160_v49 = vadd.f32 %v1159_v34, %v1158_v33  ;;  %v89_v9 = vadd.f32 %v88_v58, %v87_v30 }
 0x261   :  { %1194 = vadd.xlane.f32.xlu0 %v1193_v19  ;;  %v1207_v13 = vpop.xlane.xlu1 %1206 }
 0x262   :  { %v1208_v46 = vrot.slane %v1207_v13, 4  ;;  %v1161_v21 = vrot.slane %v1160_v49, 2  ;;  %v90_v28 = vrot.slane %v89_v9, 1 }
 0x264   :  { %v1209_v48 = vadd.f32 %v1208_v46, %v1207_v13  ;;  %v1162_v11 = vadd.f32 %v1161_v21, %v1160_v49  ;;  %v91_v7 = vadd.f32 %v90_v28, %v89_v9 }
 0x266   :  { %v1210_v38 = vrot.slane %v1209_v48, 2  ;;  %v1163_v22 = vrot.slane %v1162_v11, 1 }
 0x268   :  { %v1211_v45 = vadd.f32 %v1210_v38, %v1209_v48  ;;  %v1164_v10 = vadd.f32 %v1163_v22, %v1162_v11 }
 0x26a   :  { %v1212_v50 = vrot.slane %v1211_v45, 1 }
 0x26c   :  { %v1213_v51 = vadd.f32 %v1212_v50, %v1211_v45 }
 0x2e2   :  { %v73_v14 = vpop.xlane.xlu0 %72 }
 0x2e3   :  { %v74_v31 = vrot.slane %v73_v14, 4 }
 0x2e5   :  { %v75_v4 = vadd.f32 %v74_v31, %v73_v14 }
 0x2e6   :  { %v1022_v17 = vpop.xlane.xlu0 %1021 }
 0x2e7   :  { %v76_v3 = vrot.slane %v75_v4, 2  ;;  %v1023_v60 = vrot.slane %v1022_v17, 4 }
 0x2e9   :  { %v1024_v8 = vadd.f32 %v1023_v60, %v1022_v17  ;;  %v77_v56 = vadd.f32 %v76_v3, %v75_v4 }
 0x2ea   :  { %v1195_v44 = vpop.xlane.xlu0 %1194 }
 0x2eb   :  { %v1025_v55 = vrot.slane %v1024_v8, 2  ;;  %v1196_v27 = vrot.slane %v1195_v44, 4  ;;  %v78_v24 = vrot.slane %v77_v56, 1 }
 0x2ed   :  { %v1197_v15 = vadd.f32 %v1196_v27, %v1195_v44  ;;  %v79_v47 = vadd.f32 %v78_v24, %v77_v56  ;;  %v1026_v39 = vadd.f32 %v1025_v55, %v1024_v8 }
 0x2ef   :  { %v1198_v36 = vrot.slane %v1197_v15, 2  ;;  %1311 = vpush %v79_v47  ;;  %v1027_v0 = vrot.slane %v1026_v39, 1 }
 0x2f0   :  { %1313 = vpush %v91_v7 }
 0x2f1   :  { %v1199_v12 = vadd.f32 %v1198_v36, %v1197_v15  ;;  %v1028_v52 = vadd.f32 %v1027_v0, %v1026_v39 }
 0x2f3   :  { %1315 = vpush %v1028_v52  ;;  %v1200_v32 = vrot.slane %v1199_v12, 1 }
 0x2f4   :  { %1317 = vpush %v1164_v10 }
 0x2f5   :  { %v1201_v41 = vadd.f32 %v1200_v32, %v1199_v12 }
 0x2f7   :  { %1319 = vpush %v1201_v41 }
 0x2f8   :  { %1321 = vpush %v1213_v51 }
 0x320   :  { %s2978_s6 = spop %1311 }
 0x321   :  { %s1314_s9 = spop %1313 }
 0x322   :  { %s1215_s11 = smax.f32 %s1538_s10, %s1314_s9 }
 0x323   :  { %v1216_v63 = vstv %s1215_s11 }
 0x324   :  { %1472 = vrcp.f32 %v1216_v63  ;;  %s2980_s12 = spop %1315 }
 0x325   :  { %s1318_s13 = spop %1317 }
 0x326   :  { %s1220_s14 = smax.f32 %s1538_s10, %s1318_s13 }
 0x327   :  { %v1221_v43 = vstv %s1220_s14 }
 0x328   :  { %1474 = vrcp.f32 %v1221_v43  ;;  %s1320_s15 = spop %1319 }
 0x329   :  { %s1322_s16 = spop %1321 }
 0x32a   :  { %s1225_s17 = smax.f32 %s1538_s10, %s1322_s16 }
 0x32b   :  { %v1226_v23 = vstv %s1225_s17 }
 0x32c   :  { %1476 = vrcp.f32 %v1226_v23 }
 0x331   :  { %v1473_v1 = vpop.eup %1472 }
 0x332   :  { %1323 = vpush %v1473_v1 }
 0x335   :  { %v1475_v57 = vpop.eup %1474 }
 0x336   :  { %1325 = vpush %v1475_v57 }
 0x339   :  { %v1477_v59 = vpop.eup %1476 }
 0x33a   :  { %1327 = vpush %v1477_v59 }
 0x363   :  { %s1324_s20 = spop %1323 }
 0x364   :  { %s1219_s22 = smul.f32 %s1324_s20, %s2978_s6  ;;  %s1539_s6 = smov [#allocation5]  }
 0x365   :  { %s1263_s9 = sshll.u32 %s1539_s6, 4  ;;  %s1264_s9 = int_to_ptr.vmem [resolvable:$true] %s1263_s9 }
 0x366   :  { %s1231_s3 = smul.f32 %s1230_s18, %s1219_s22  ;;  %s1511_s10 = scalar_lea.vmem %s1264_s9, 16 }
 0x367   :  { %s1326_s25 = spop %1325  ;;  %p1512_p5 = scmp.ne.s32.totalorder %s1264_s9, %s1511_s10 }
 0x368   :  { %s1224_s27 = smul.f32 %s1326_s25, %s2980_s12  ;;  %v1254_v35 = vstv %s1231_s3  ;;  %s1515_s11 = scalar_lea.vmem %s1264_s9, 32 }
 0x369   :  { %s1237_s28 = smul.f32 %s1308_s19, %s1231_s3  ;;  %p1516_p6 = scmp.lt.s32.totalorder %s1264_s9, %s1264_s9 }
 0x36a   :  { %s1233_s1 = smul.f32 %s1306_s21, %s1224_s27  ;;  %p1517_p7 = scmp.lt.s32.totalorder %s1515_s11, %s1511_s10 }
 0x36b   :  { %s1328_s5 = spop %1327 }
 0x36c   :  { %s1229_s29 = smul.f32 %s1328_s5, %s1320_s15  ;;  %v1252_v29 = vstv %s1233_s1  ;;  %p1518_p8 = por %p1517_p7, %p1516_p6 }
 0x36d   :  { %s1239_s30 = smul.f32 %s1309_s23, %s1233_s1 }
 0x36e   :  { %s1235_s2 = smul.f32 %s1307_s24, %s1229_s29  ;;  %p1519_p9 = pnand %p1518_p8, %p1512_p5 }
 0x36f   :  { %s1240_s0 = sadd.f32 %s1239_s30, %s1237_s28 }
 0x370   :  { %s1242_s4 = smul.f32 %s1310_s26, %s1235_s2  ;;  %v1250_v53 = vstv %s1235_s2 }
 0x372   :  { %s1243_s8 = sadd.f32 %s1242_s4, %s1240_s0 }
 0x374   :  { %v1248_v61 = vstv %s1243_s8 }
 0x375   :  { %v1249_v37 = vsel %vm1247_vm1, %v1248_v61, 0.0 }
 0x376   :  { %v1251_v62 = vsel %vm1246_vm2, %v1250_v53, %v1249_v37 }
 0x377   :  { %v1253_v26 = vsel %vm1245_vm11, %v1252_v29, %v1251_v62 }
 0x378   :  { %v1255_v16 = vsel %vm1244_vm4, %v1254_v35, %v1253_v26 }
 0x379   :  { %1256 = vst [vmem:[#allocation5] sm:$0x1] %v1255_v16 }
 0x37a   :  { %1522 = shalt.err (!%p1519_p9)
}
 0x37b   :  { %1266 = dma.vmem_to_hbm [thread:$0]  %s1264_s9, 16, %s2998_s7, [#allocation3]  }
 0x37c   :  { %1533 = dma.done.wait [#allocation3], 16  }
 0x37d   :  { %1534 = vsyncadd [#allocation3], 4294967280 }
 0x37e   :  { %1270 = vsyncpa [#allocation3], 1 }
 0x37f   :  { %1271 = vsyncpa [#allocation4], 1 }

</bundles_post_ra>
